<compile_context>
chip_gen: v5e
topology: v5e:2x2
jax: 0.10.0
libtpu: 0.0.40
codegen_flags: <defaults>
</compile_context>

<pallas_src>
import functools

import jax
import jax.numpy as jnp
from jax.experimental import pallas as pl
from jax.experimental.pallas import tpu as pltpu


def _dilconv_kernel(x_ref, dw_ref, s1_ref, b1_ref, pw_ref, s2_ref, b2_ref, o_ref,
                    *, K, Ho, Wo):
    """Fused DilConv (dilation=1, stride handled in the wrapper).

    x_ref : (1, Hp, Wp, C_in)  zero-padded NHWC input block (one sample)
    dw_ref: (K*K, C_in)        depthwise taps, row = kh*K + kw
    s1/b1 : (1, C_in)          folded BN1 scale / bias
    pw_ref: (C_in, C_out)      pointwise 1x1 weights
    s2/b2 : (1, C_out)         folded BN2 scale / bias
    o_ref : (1, Ho, Wo, C_out)
    """
    C_in = x_ref.shape[-1]

    # Depthwise conv: K*K unrolled taps, f32 accumulation on the VPU.
    acc = jnp.zeros((Ho, Wo, C_in), jnp.float32)
    for kh in range(K):
        for kw in range(K):
            patch = x_ref[0, kh:kh + Ho, kw:kw + Wo, :].astype(jnp.float32)
            tap = dw_ref[kh * K + kw, :].astype(jnp.float32)      # (C_in,)
            acc = acc + patch * tap                               # lane broadcast

    # BN1 (folded) + ReLU.
    h = acc * s1_ref[0, :] + b1_ref[0, :]
    h = jnp.maximum(h, 0.0)

    # Pointwise 1x1 conv on the MXU: (Ho*Wo, C_in) @ (C_in, C_out).
    h2 = jnp.dot(h.reshape(Ho * Wo, C_in),
                 pw_ref[...].astype(jnp.float32),
                 preferred_element_type=jnp.float32)

    # BN2 (folded).
    y = h2 * s2_ref[0, :] + b2_ref[0, :]
    o_ref[0] = y.reshape(Ho, Wo, -1).astype(o_ref.dtype)


def _fold_bn(gamma, beta, mean, var, eps=1e-5):
    scale = gamma / jnp.sqrt(var + eps)
    bias = beta - mean * scale
    return scale.astype(jnp.float32), bias.astype(jnp.float32)


def dil_conv_nhwc(x, dw_w, bn1, pw_w, bn2, *, kernel_size, stride, padding):
    """One DilConv block. x: (N, H, W, C_in) NHWC, dw_w: (K, K, C_in),
    pw_w: (C_in, C_out), bn1/bn2 = (gamma, beta, running_mean, running_var)."""
    N, H, W, C_in = x.shape
    K = kernel_size
    C_out = pw_w.shape[1]

    xp = jnp.pad(x, ((0, 0), (padding, padding), (padding, padding), (0, 0)))
    Hp, Wp = H + 2 * padding, W + 2 * padding
    Ho, Wo = Hp - K + 1, Wp - K + 1          # stride-1 output, subsampled below

    s1, b1 = _fold_bn(*bn1)
    s2, b2 = _fold_bn(*bn2)
    dw_flat = dw_w.reshape(K * K, C_in).astype(jnp.float32)
    s1 = s1.reshape(1, C_in)
    b1 = b1.reshape(1, C_in)
    s2 = s2.reshape(1, C_out)
    b2 = b2.reshape(1, C_out)

    kernel = functools.partial(_dilconv_kernel, K=K, Ho=Ho, Wo=Wo)
    out = pl.pallas_call(
        kernel,
        out_shape=jax.ShapeDtypeStruct((N, Ho, Wo, C_out), x.dtype),
        grid=(N,),
        in_specs=[
            pl.BlockSpec((1, Hp, Wp, C_in), lambda b: (b, 0, 0, 0)),
            pl.BlockSpec((K * K, C_in), lambda b: (0, 0)),
            pl.BlockSpec((1, C_in), lambda b: (0, 0)),
            pl.BlockSpec((1, C_in), lambda b: (0, 0)),
            pl.BlockSpec((C_in, C_out), lambda b: (0, 0)),
            pl.BlockSpec((1, C_out), lambda b: (0, 0)),
            pl.BlockSpec((1, C_out), lambda b: (0, 0)),
        ],
        out_specs=pl.BlockSpec((1, Ho, Wo, C_out), lambda b: (b, 0, 0, 0)),
        compiler_params=pltpu.CompilerParams(
            dimension_semantics=("parallel",),   # batch axis shardable across TCs
        ),
    )(xp, dw_flat, s1, b1, pw_w.astype(jnp.float32), s2, b2)

    if stride > 1:
        # Strided depthwise conv followed by pointwise-only ops == spatial
        # subsample of the stride-1 result.
        out = out[:, ::stride, ::stride, :]
    return out


def sep_conv(x_nchw, params, *, kernel_size, stride, padding):
    """SepConv forward. x_nchw: (N, C_in, H, W) -> (N, C_out, H', W')."""
    x = jnp.transpose(x_nchw, (0, 2, 3, 1))          # NCHW -> NHWC
    y = dil_conv_nhwc(x, params["dw1"], params["bn1a"], params["pw1"], params["bn1b"],
                      kernel_size=kernel_size, stride=stride, padding=padding)
    y = dil_conv_nhwc(y, params["dw2"], params["bn2a"], params["pw2"], params["bn2b"],
                      kernel_size=kernel_size, stride=1, padding=padding)
    return jnp.transpose(y, (0, 3, 1, 2))            # NHWC -> NCHW


# ----------------------- pure-JAX reference (for the check) -----------------------

def _ref_dilconv_nhwc(x, dw_w, bn1, pw_w, bn2, *, kernel_size, stride, padding):
    C_in = x.shape[-1]
    dw = dw_w.reshape(kernel_size, kernel_size, 1, C_in)
    y = jax.lax.conv_general_dilated(
        x, dw, window_strides=(stride, stride),
        padding=[(padding, padding), (padding, padding)],
        dimension_numbers=("NHWC", "HWIO", "NHWC"),
        feature_group_count=C_in)
    s1, b1 = _fold_bn(*bn1)
    y = jnp.maximum(y * s1 + b1, 0.0)
    y = jnp.einsum("nhwc,cd->nhwd", y, pw_w)
    s2, b2 = _fold_bn(*bn2)
    return y * s2 + b2


def sep_conv_ref(x_nchw, params, *, kernel_size, stride, padding):
    x = jnp.transpose(x_nchw, (0, 2, 3, 1))
    y = _ref_dilconv_nhwc(x, params["dw1"], params["bn1a"], params["pw1"], params["bn1b"],
                          kernel_size=kernel_size, stride=stride, padding=padding)
    y = _ref_dilconv_nhwc(y, params["dw2"], params["bn2a"], params["pw2"], params["bn2b"],
                          kernel_size=kernel_size, stride=1, padding=padding)
    return jnp.transpose(y, (0, 3, 1, 2))


if __name__ == "__main__":
    key = jax.random.PRNGKey(0)
    N, C, H, W = 2, 8, 16, 16          # SepConv as written requires C_in == C_out
    K, STRIDE, PAD = 3, 1, 1
    keys = jax.random.split(key, 9)

    x = jax.random.normal(keys[0], (N, C, H, W), dtype=jnp.float32)

    def bn_params(k, c):
        k1, k2 = jax.random.split(k)
        gamma = 1.0 + 0.1 * jax.random.normal(k1, (c,), jnp.float32)
        beta = 0.1 * jax.random.normal(k2, (c,), jnp.float32)
        mean = jnp.zeros((c,), jnp.float32)
        var = jnp.ones((c,), jnp.float32)
        return (gamma, beta, mean, var)

    params = {
        "dw1": 0.1 * jax.random.normal(keys[1], (K, K, C), jnp.float32),
        "pw1": 0.1 * jax.random.normal(keys[2], (C, C), jnp.float32),
        "bn1a": bn_params(keys[3], C),
        "bn1b": bn_params(keys[4], C),
        "dw2": 0.1 * jax.random.normal(keys[5], (K, K, C), jnp.float32),
        "pw2": 0.1 * jax.random.normal(keys[6], (C, C), jnp.float32),
        "bn2a": bn_params(keys[7], C),
        "bn2b": bn_params(keys[8], C),
    }

    y = sep_conv(x, params, kernel_size=K, stride=STRIDE, padding=PAD)
    y = jax.block_until_ready(y)

    y_ref = jax.block_until_ready(
        sep_conv_ref(x, params, kernel_size=K, stride=STRIDE, padding=PAD))

    if y.shape == y_ref.shape and bool(jnp.allclose(y, y_ref, rtol=1e-3, atol=1e-3)):
        print("KERNEL_OK")
    else:
        raise SystemExit("SepConv Pallas kernel mismatch vs reference")
</pallas_src>

<mosaic_0001>
module attributes {stable_mosaic.version = 11 : i64} {
  func.func @_dilconv_kernel(%arg0: i32, %arg1: memref<1x18x18x8xf32, #tpu.memory_space<vmem>>, %arg2: memref<9x8xf32, #tpu.memory_space<vmem>>, %arg3: memref<1x8xf32, #tpu.memory_space<vmem>>, %arg4: memref<1x8xf32, #tpu.memory_space<vmem>>, %arg5: memref<8x8xf32, #tpu.memory_space<vmem>>, %arg6: memref<1x8xf32, #tpu.memory_space<vmem>>, %arg7: memref<1x8xf32, #tpu.memory_space<vmem>>, %arg8: memref<1x16x16x8xf32, #tpu.memory_space<vmem>>) attributes {dimension_semantics = [#tpu.dimension_semantics<parallel>], iteration_bounds = array<i64: 2>, scalar_prefetch = 0 : i64, scratch_operands = 0 : i64, tpu.core_type = #tpu.core_type<tc>, window_params = [{transform_indices = @transform_0, window_bounds = array<i64: 1, 18, 18, 8>}, {pipeline_mode = #tpu.pipeline_mode<synchronous>, transform_indices = @transform_1, window_bounds = array<i64: 9, 8>}, {pipeline_mode = #tpu.pipeline_mode<synchronous>, transform_indices = @transform_2, window_bounds = array<i64: 1, 8>}, {pipeline_mode = #tpu.pipeline_mode<synchronous>, transform_indices = @transform_3, window_bounds = array<i64: 1, 8>}, {pipeline_mode = #tpu.pipeline_mode<synchronous>, transform_indices = @transform_4, window_bounds = array<i64: 8, 8>}, {pipeline_mode = #tpu.pipeline_mode<synchronous>, transform_indices = @transform_5, window_bounds = array<i64: 1, 8>}, {pipeline_mode = #tpu.pipeline_mode<synchronous>, transform_indices = @transform_6, window_bounds = array<i64: 1, 8>}, {transform_indices = @transform_7, window_bounds = array<i64: 1, 16, 16, 8>}]} {
    %cst = arith.constant 0.000000e+00 : f32
    %0 = vector.broadcast %cst : f32 to vector<16x16x8xf32>
    %c0 = arith.constant 0 : index
    %c0_0 = arith.constant 0 : index
    %c0_1 = arith.constant 0 : index
    %c0_2 = arith.constant 0 : index
    %1 = vector.load %arg1[%c0, %c0_0, %c0_1, %c0_2] : memref<1x18x18x8xf32, #tpu.memory_space<vmem>>, vector<1x16x16x8xf32>
    %2 = vector.shape_cast %1 : vector<1x16x16x8xf32> to vector<16x16x8xf32>
    %c0_3 = arith.constant 0 : index
    %c0_4 = arith.constant 0 : index
    %3 = vector.load %arg2[%c0_3, %c0_4] : memref<9x8xf32, #tpu.memory_space<vmem>>, vector<1x8xf32>
    %4 = vector.shape_cast %3 : vector<1x8xf32> to vector<8xf32>
    %5 = vector.shape_cast %4 : vector<8xf32> to vector<1x1x8xf32>
    %6 = vector.broadcast %5 : vector<1x1x8xf32> to vector<16x16x8xf32>
    %7 = arith.mulf %2, %6 : vector<16x16x8xf32>
    %8 = arith.addf %0, %7 : vector<16x16x8xf32>
    %c0_5 = arith.constant 0 : index
    %c0_6 = arith.constant 0 : index
    %c1 = arith.constant 1 : index
    %c0_7 = arith.constant 0 : index
    %9 = vector.load %arg1[%c0_5, %c0_6, %c1, %c0_7] : memref<1x18x18x8xf32, #tpu.memory_space<vmem>>, vector<1x16x16x8xf32>
    %10 = vector.shape_cast %9 : vector<1x16x16x8xf32> to vector<16x16x8xf32>
    %c1_8 = arith.constant 1 : index
    %c0_9 = arith.constant 0 : index
    %11 = vector.load %arg2[%c1_8, %c0_9] : memref<9x8xf32, #tpu.memory_space<vmem>>, vector<1x8xf32>
    %12 = vector.shape_cast %11 : vector<1x8xf32> to vector<8xf32>
    %13 = vector.shape_cast %12 : vector<8xf32> to vector<1x1x8xf32>
    %14 = vector.broadcast %13 : vector<1x1x8xf32> to vector<16x16x8xf32>
    %15 = arith.mulf %10, %14 : vector<16x16x8xf32>
    %16 = arith.addf %8, %15 : vector<16x16x8xf32>
    %c0_10 = arith.constant 0 : index
    %c0_11 = arith.constant 0 : index
    %c2 = arith.constant 2 : index
    %c0_12 = arith.constant 0 : index
    %17 = vector.load %arg1[%c0_10, %c0_11, %c2, %c0_12] : memref<1x18x18x8xf32, #tpu.memory_space<vmem>>, vector<1x16x16x8xf32>
    %18 = vector.shape_cast %17 : vector<1x16x16x8xf32> to vector<16x16x8xf32>
    %c2_13 = arith.constant 2 : index
    %c0_14 = arith.constant 0 : index
    %19 = vector.load %arg2[%c2_13, %c0_14] : memref<9x8xf32, #tpu.memory_space<vmem>>, vector<1x8xf32>
    %20 = vector.shape_cast %19 : vector<1x8xf32> to vector<8xf32>
    %21 = vector.shape_cast %20 : vector<8xf32> to vector<1x1x8xf32>
    %22 = vector.broadcast %21 : vector<1x1x8xf32> to vector<16x16x8xf32>
    %23 = arith.mulf %18, %22 : vector<16x16x8xf32>
    %24 = arith.addf %16, %23 : vector<16x16x8xf32>
    %c0_15 = arith.constant 0 : index
    %c1_16 = arith.constant 1 : index
    %c0_17 = arith.constant 0 : index
    %c0_18 = arith.constant 0 : index
    %25 = vector.load %arg1[%c0_15, %c1_16, %c0_17, %c0_18] : memref<1x18x18x8xf32, #tpu.memory_space<vmem>>, vector<1x16x16x8xf32>
    %26 = vector.shape_cast %25 : vector<1x16x16x8xf32> to vector<16x16x8xf32>
    %c3 = arith.constant 3 : index
    %c0_19 = arith.constant 0 : index
    %27 = vector.load %arg2[%c3, %c0_19] : memref<9x8xf32, #tpu.memory_space<vmem>>, vector<1x8xf32>
    %28 = vector.shape_cast %27 : vector<1x8xf32> to vector<8xf32>
    %29 = vector.shape_cast %28 : vector<8xf32> to vector<1x1x8xf32>
    %30 = vector.broadcast %29 : vector<1x1x8xf32> to vector<16x16x8xf32>
    %31 = arith.mulf %26, %30 : vector<16x16x8xf32>
    %32 = arith.addf %24, %31 : vector<16x16x8xf32>
    %c0_20 = arith.constant 0 : index
    %c1_21 = arith.constant 1 : index
    %c1_22 = arith.constant 1 : index
    %c0_23 = arith.constant 0 : index
    %33 = vector.load %arg1[%c0_20, %c1_21, %c1_22, %c0_23] : memref<1x18x18x8xf32, #tpu.memory_space<vmem>>, vector<1x16x16x8xf32>
    %34 = vector.shape_cast %33 : vector<1x16x16x8xf32> to vector<16x16x8xf32>
    %c4 = arith.constant 4 : index
    %c0_24 = arith.constant 0 : index
    %35 = vector.load %arg2[%c4, %c0_24] : memref<9x8xf32, #tpu.memory_space<vmem>>, vector<1x8xf32>
    %36 = vector.shape_cast %35 : vector<1x8xf32> to vector<8xf32>
    %37 = vector.shape_cast %36 : vector<8xf32> to vector<1x1x8xf32>
    %38 = vector.broadcast %37 : vector<1x1x8xf32> to vector<16x16x8xf32>
    %39 = arith.mulf %34, %38 : vector<16x16x8xf32>
    %40 = arith.addf %32, %39 : vector<16x16x8xf32>
    %c0_25 = arith.constant 0 : index
    %c1_26 = arith.constant 1 : index
    %c2_27 = arith.constant 2 : index
    %c0_28 = arith.constant 0 : index
    %41 = vector.load %arg1[%c0_25, %c1_26, %c2_27, %c0_28] : memref<1x18x18x8xf32, #tpu.memory_space<vmem>>, vector<1x16x16x8xf32>
    %42 = vector.shape_cast %41 : vector<1x16x16x8xf32> to vector<16x16x8xf32>
    %c5 = arith.constant 5 : index
    %c0_29 = arith.constant 0 : index
    %43 = vector.load %arg2[%c5, %c0_29] : memref<9x8xf32, #tpu.memory_space<vmem>>, vector<1x8xf32>
    %44 = vector.shape_cast %43 : vector<1x8xf32> to vector<8xf32>
    %45 = vector.shape_cast %44 : vector<8xf32> to vector<1x1x8xf32>
    %46 = vector.broadcast %45 : vector<1x1x8xf32> to vector<16x16x8xf32>
    %47 = arith.mulf %42, %46 : vector<16x16x8xf32>
    %48 = arith.addf %40, %47 : vector<16x16x8xf32>
    %c0_30 = arith.constant 0 : index
    %c2_31 = arith.constant 2 : index
    %c0_32 = arith.constant 0 : index
    %c0_33 = arith.constant 0 : index
    %49 = vector.load %arg1[%c0_30, %c2_31, %c0_32, %c0_33] : memref<1x18x18x8xf32, #tpu.memory_space<vmem>>, vector<1x16x16x8xf32>
    %50 = vector.shape_cast %49 : vector<1x16x16x8xf32> to vector<16x16x8xf32>
    %c6 = arith.constant 6 : index
    %c0_34 = arith.constant 0 : index
    %51 = vector.load %arg2[%c6, %c0_34] : memref<9x8xf32, #tpu.memory_space<vmem>>, vector<1x8xf32>
    %52 = vector.shape_cast %51 : vector<1x8xf32> to vector<8xf32>
    %53 = vector.shape_cast %52 : vector<8xf32> to vector<1x1x8xf32>
    %54 = vector.broadcast %53 : vector<1x1x8xf32> to vector<16x16x8xf32>
    %55 = arith.mulf %50, %54 : vector<16x16x8xf32>
    %56 = arith.addf %48, %55 : vector<16x16x8xf32>
    %c0_35 = arith.constant 0 : index
    %c2_36 = arith.constant 2 : index
    %c1_37 = arith.constant 1 : index
    %c0_38 = arith.constant 0 : index
    %57 = vector.load %arg1[%c0_35, %c2_36, %c1_37, %c0_38] : memref<1x18x18x8xf32, #tpu.memory_space<vmem>>, vector<1x16x16x8xf32>
    %58 = vector.shape_cast %57 : vector<1x16x16x8xf32> to vector<16x16x8xf32>
    %c7 = arith.constant 7 : index
    %c0_39 = arith.constant 0 : index
    %59 = vector.load %arg2[%c7, %c0_39] : memref<9x8xf32, #tpu.memory_space<vmem>>, vector<1x8xf32>
    %60 = vector.shape_cast %59 : vector<1x8xf32> to vector<8xf32>
    %61 = vector.shape_cast %60 : vector<8xf32> to vector<1x1x8xf32>
    %62 = vector.broadcast %61 : vector<1x1x8xf32> to vector<16x16x8xf32>
    %63 = arith.mulf %58, %62 : vector<16x16x8xf32>
    %64 = arith.addf %56, %63 : vector<16x16x8xf32>
    %c0_40 = arith.constant 0 : index
    %c2_41 = arith.constant 2 : index
    %c2_42 = arith.constant 2 : index
    %c0_43 = arith.constant 0 : index
    %65 = vector.load %arg1[%c0_40, %c2_41, %c2_42, %c0_43] : memref<1x18x18x8xf32, #tpu.memory_space<vmem>>, vector<1x16x16x8xf32>
    %66 = vector.shape_cast %65 : vector<1x16x16x8xf32> to vector<16x16x8xf32>
    %c8 = arith.constant 8 : index
    %c0_44 = arith.constant 0 : index
    %67 = vector.load %arg2[%c8, %c0_44] : memref<9x8xf32, #tpu.memory_space<vmem>>, vector<1x8xf32>
    %68 = vector.shape_cast %67 : vector<1x8xf32> to vector<8xf32>
    %69 = vector.shape_cast %68 : vector<8xf32> to vector<1x1x8xf32>
    %70 = vector.broadcast %69 : vector<1x1x8xf32> to vector<16x16x8xf32>
    %71 = arith.mulf %66, %70 : vector<16x16x8xf32>
    %72 = arith.addf %64, %71 : vector<16x16x8xf32>
    %c0_45 = arith.constant 0 : index
    %c0_46 = arith.constant 0 : index
    %73 = vector.load %arg3[%c0_45, %c0_46] : memref<1x8xf32, #tpu.memory_space<vmem>>, vector<1x8xf32>
    %74 = vector.shape_cast %73 : vector<1x8xf32> to vector<8xf32>
    %75 = vector.shape_cast %74 : vector<8xf32> to vector<1x1x8xf32>
    %76 = vector.broadcast %75 : vector<1x1x8xf32> to vector<16x16x8xf32>
    %77 = arith.mulf %72, %76 : vector<16x16x8xf32>
    %c0_47 = arith.constant 0 : index
    %c0_48 = arith.constant 0 : index
    %78 = vector.load %arg4[%c0_47, %c0_48] : memref<1x8xf32, #tpu.memory_space<vmem>>, vector<1x8xf32>
    %79 = vector.shape_cast %78 : vector<1x8xf32> to vector<8xf32>
    %80 = vector.shape_cast %79 : vector<8xf32> to vector<1x1x8xf32>
    %81 = vector.broadcast %80 : vector<1x1x8xf32> to vector<16x16x8xf32>
    %82 = arith.addf %77, %81 : vector<16x16x8xf32>
    %cst_49 = arith.constant 0.000000e+00 : f32
    %83 = vector.broadcast %cst_49 : f32 to vector<16x16x8xf32>
    %84 = arith.maximumf %82, %83 : vector<16x16x8xf32>
    %85 = vector.shape_cast %84 : vector<16x16x8xf32> to vector<256x8xf32>
    %c0_50 = arith.constant 0 : index
    %c0_51 = arith.constant 0 : index
    %86 = vector.load %arg5[%c0_50, %c0_51] : memref<8x8xf32, #tpu.memory_space<vmem>>, vector<8x8xf32>
    %cst_52 = arith.constant dense<0.000000e+00> : vector<256x8xf32>
    %87 = tpu.matmul %85, %86, %cst_52 {dimension_numbers = #tpu.dot_dimension_numbers<[1], [0], [0], [1], [0, 0, 1, 1], [], []>} : vector<256x8xf32>, vector<8x8xf32>, vector<256x8xf32> -> vector<256x8xf32>
    %c0_53 = arith.constant 0 : index
    %c0_54 = arith.constant 0 : index
    %88 = vector.load %arg6[%c0_53, %c0_54] : memref<1x8xf32, #tpu.memory_space<vmem>>, vector<1x8xf32>
    %89 = vector.shape_cast %88 : vector<1x8xf32> to vector<8xf32>
    %90 = vector.shape_cast %89 : vector<8xf32> to vector<1x8xf32>
    %91 = vector.broadcast %90 : vector<1x8xf32> to vector<256x8xf32>
    %92 = arith.mulf %87, %91 : vector<256x8xf32>
    %c0_55 = arith.constant 0 : index
    %c0_56 = arith.constant 0 : index
    %93 = vector.load %arg7[%c0_55, %c0_56] : memref<1x8xf32, #tpu.memory_space<vmem>>, vector<1x8xf32>
    %94 = vector.shape_cast %93 : vector<1x8xf32> to vector<8xf32>
    %95 = vector.shape_cast %94 : vector<8xf32> to vector<1x8xf32>
    %96 = vector.broadcast %95 : vector<1x8xf32> to vector<256x8xf32>
    %97 = arith.addf %92, %96 : vector<256x8xf32>
    %98 = vector.shape_cast %97 : vector<256x8xf32> to vector<16x16x8xf32>
    %c0_57 = arith.constant 0 : index
    %c0_58 = arith.constant 0 : index
    %c0_59 = arith.constant 0 : index
    %c0_60 = arith.constant 0 : index
    %99 = vector.load %arg8[%c0_57, %c0_58, %c0_59, %c0_60] : memref<1x16x16x8xf32, #tpu.memory_space<vmem>>, vector<1x16x16x8xf32>
    %100 = vector.shape_cast %99 : vector<1x16x16x8xf32> to vector<16x16x8xf32>
    %101 = vector.shape_cast %98 : vector<16x16x8xf32> to vector<1x16x16x8xf32>
    tpu.vector_store %arg8[%c0_57, %c0_58, %c0_59, %c0_60], %101 {strides = array<i32>} : memref<1x16x16x8xf32, #tpu.memory_space<vmem>>, vector<1x16x16x8xf32>,
    return
  }
  func.func @transform_0(%arg0: i32) -> (i32, i32, i32, i32) {
    %c0_i32 = arith.constant 0 : i32
    %c0_i32_0 = arith.constant 0 : i32
    %c0_i32_1 = arith.constant 0 : i32
    %c0_i32_2 = arith.constant 0 : i32
    return %arg0, %c0_i32, %c0_i32_0, %c0_i32_1 : i32, i32, i32, i32
  }
  func.func @transform_1(%arg0: i32) -> (i32, i32) {
    %c0_i32 = arith.constant 0 : i32
    %c0_i32_0 = arith.constant 0 : i32
    %c0_i32_1 = arith.constant 0 : i32
    return %c0_i32, %c0_i32_0 : i32, i32
  }
  func.func @transform_2(%arg0: i32) -> (i32, i32) {
    %c0_i32 = arith.constant 0 : i32
    %c0_i32_0 = arith.constant 0 : i32
    %c0_i32_1 = arith.constant 0 : i32
    return %c0_i32, %c0_i32_0 : i32, i32
  }
  func.func @transform_3(%arg0: i32) -> (i32, i32) {
    %c0_i32 = arith.constant 0 : i32
    %c0_i32_0 = arith.constant 0 : i32
    %c0_i32_1 = arith.constant 0 : i32
    return %c0_i32, %c0_i32_0 : i32, i32
  }
  func.func @transform_4(%arg0: i32) -> (i32, i32) {
    %c0_i32 = arith.constant 0 : i32
    %c0_i32_0 = arith.constant 0 : i32
    %c0_i32_1 = arith.constant 0 : i32
    return %c0_i32, %c0_i32_0 : i32, i32
  }
  func.func @transform_5(%arg0: i32) -> (i32, i32) {
    %c0_i32 = arith.constant 0 : i32
    %c0_i32_0 = arith.constant 0 : i32
    %c0_i32_1 = arith.constant 0 : i32
    return %c0_i32, %c0_i32_0 : i32, i32
  }
  func.func @transform_6(%arg0: i32) -> (i32, i32) {
    %c0_i32 = arith.constant 0 : i32
    %c0_i32_0 = arith.constant 0 : i32
    %c0_i32_1 = arith.constant 0 : i32
    return %c0_i32, %c0_i32_0 : i32, i32
  }
  func.func @transform_7(%arg0: i32) -> (i32, i32, i32, i32) {
    %c0_i32 = arith.constant 0 : i32
    %c0_i32_0 = arith.constant 0 : i32
    %c0_i32_1 = arith.constant 0 : i32
    %c0_i32_2 = arith.constant 0 : i32
    return %arg0, %c0_i32, %c0_i32_0, %c0_i32_1 : i32, i32, i32, i32
  }
}

</mosaic_0001>

<bundles_post_ra>
// kernel: tpu_custom_call.1
= control target key start
LH: loop header
LB: loop body
LE: loop exit
PB: predicated region body
PF: predicated region fallthrough
CT: control target
= control target key end

     0   :  { %s1956_s24 = smov 0   ;;  %s3204_s0 = inlined_call_operand.vmem [shape: f32[2,18,18,8], index: 0, kind: input, shape index: {}]   ;;  %s3205_s1 = inlined_call_operand.vmem [shape: f32[9,8], index: 1, kind: input, shape index: {}]   ;;  %s3206_s2 = inlined_call_operand.vmem [shape: f32[1,8], index: 2, kind: input, shape index: {}]   ;;  %s3207_s3 = inlined_call_operand.vmem [shape: f32[1,8], index: 3, kind: input, shape index: {}]   ;;  %s3208_s4 = inlined_call_operand.vmem [shape: f32[8,8], index: 4, kind: input, shape index: {}]   ;;  %s3209_s5 = inlined_call_operand.vmem [shape: f32[1,8], index: 5, kind: input, shape index: {}]   ;;  %s3210_s6 = inlined_call_operand.vmem [shape: f32[1,8], index: 6, kind: input, shape index: {}]   ;;  %s3211_s7 = inlined_call_operand.vmem [shape: f32[2,16,16,8], index: 7, kind: output, shape index: {}]  }
   0x1 LB: > { %s1637_s25 = sadd.s32 4294967295, %s1914_s24   ;;  %p1641_p0 = scmp.ge.s32.totalorder %s1914_s24, 1  ;;  %s1914_s24 = sphi %s1956_s24, %s17_s24  }
   0x2   : > { %p237_p1 = scmp.lt.s32.totalorder %s1914_s24, 3 }
   0x4   : > { %p238_p2 = pnand %p1641_p0, %p237_p1 }
   0x6   : > { %241 = sbr.rel (%p238_p2) target bundleno = 324 (0x144), region = 48 }
   0xb   : > { %v1267_v0 = vld [vmem:[%s3208_s4] sm:$0xff]  ;;  %p269_p3 = scmp.lt.s32.totalorder %s1637_s25, 1  ;;  %v2018_v9 = vld [vmem:[%s3205_s1 + $0x8] ss:$0 sm:$0xff]  ;;  %vm1268_vm0 = vcmask 64512  }
   0xc   : > { %1873 = vmatpush.msra.mxu2 %v1267_v0  ;;  %1874 = vmatpush.msra.mxu3 %v1267_v0  ;;  %v1972_v1 = vld [vmem:[%s3205_s1] ss:$0 sm:$0xff]  ;;  %v1977_v2 = vld [vmem:[%s3205_s1 + $0x1] ss:$0 sm:$0xff]  ;;  %v1982_v3 = vld [vmem:[%s3205_s1 + $0x2] ss:$0 sm:$0xff] }
   0xd   : > { %s3369_s25 = smov (!%p269_p3, %s1637_s25), 1  ;;  %1380 = vmatpush.msra.mxu0 %v1267_v0  ;;  %1872 = vmatpush.msra.mxu1 %v1267_v0  ;;  %v1988_v4 = vld [vmem:[%s3205_s1 + $0x3] ss:$0 sm:$0xff]  ;;  %v1993_v5 = vld [vmem:[%s3205_s1 + $0x4] ss:$0 sm:$0xff] }
   0xe   : > { %s1875_s11 = smul.u32 432, %s3369_s25  ;;  %v1998_v6 = vld [vmem:[%s3205_s1 + $0x5] ss:$0 sm:$0xff]  ;;  %v2003_v7 = vld [vmem:[%s3205_s1 + $0x6] ss:$0 sm:$0xff]  ;;  %s1871_s14 = sshll.u32 %s3369_s25, 8 }
   0xf   : > { %v2013_v8 = vld [vmem:[%s3205_s1 + $0x7] ss:$0 sm:$0xff]  ;;  %s3056_s18 = scalar_lea.vmem %s3211_s7, %s1871_s14 }
  0x10   : > { %s2008_s22 = scalar_lea.vmem %s3204_s0, %s1875_s11 }
  0x11   : > { %v295_v10 = vld [vmem:[%s2008_s22 + $0xc0] sm:$0xff]  ;;  %v1661_v16 = vld [vmem:[%s2008_s22 + $0xd8] sm:$0xff]  ;;  %v2030_v19 = vld [vmem:[%s2008_s22 + $0xf0] sm:$0xff] }
  0x12   : > { %v393_v11 = vld [vmem:[%s2008_s22 + $0xc1] sm:$0xff]  ;;  %v329_v13 = vmul.f32 %v1972_v1, %v295_v10  ;;  %v1693_v17 = vld [vmem:[%s2008_s22 + $0xd9] sm:$0xff]  ;;  %v2033_v20 = vld [vmem:[%s2008_s22 + $0xf1] sm:$0xff]  ;;  %v624_v23 = vmul.f32 %v1988_v4, %v1661_v16  ;;  %v919_v26 = vmul.f32 %v2003_v7, %v2030_v19  ;;  %v2082_v41 = vmul.f32 %v1972_v1, %v1661_v16 }
  0x13   : > { %v491_v12 = vld [vmem:[%s2008_s22 + $0xc2] sm:$0xff]  ;;  %v427_v14 = vmul.f32 %v1977_v2, %v393_v11  ;;  %v1725_v18 = vld [vmem:[%s2008_s22 + $0xda] sm:$0xff]  ;;  %3271 = vst [vmem:[#allocation2_spill] sm:$0xff] %v2033_v20  ;;  %v2036_v21 = vld [vmem:[%s2008_s22 + $0xf2] sm:$0xff]  ;;  %v722_v24 = vmul.f32 %v1993_v5, %v1693_v17  ;;  %v2045_v27 = vmul.f32 %v2013_v8, %v2033_v20  ;;  %v2085_v42 = vmul.f32 %v1977_v2, %v1693_v17 }
  0x14   : > { %v525_v15 = vmul.f32 %v1982_v3, %v491_v12  ;;  %3272 = vst [vmem:[#allocation3_spill] sm:$0xff] %v2036_v21  ;;  %v820_v25 = vmul.f32 %v1998_v6, %v1725_v18  ;;  %v2048_v28 = vld [vmem:[%s2008_s22 + $0x120] sm:$0xff]  ;;  %v2055_v31 = vmul.f32 %v2018_v9, %v2036_v21  ;;  %v2065_v35 = vld [vmem:[%s2008_s22 + $0x138] sm:$0xff]  ;;  %v2076_v39 = vld [vmem:[%s2008_s22 + $0x150] sm:$0xff]  ;;  %v2088_v43 = vmul.f32 %v1982_v3, %v1725_v18 }
  0x15   : > { %v459_v22 = vadd.f32 %v427_v14, %v329_v13  ;;  %3273 = vst [vmem:[#allocation4_spill] sm:$0xff] %v2048_v28  ;;  %v2051_v29 = vld [vmem:[%s2008_s22 + $0x121] sm:$0xff]  ;;  %v337_v32 = vmul.f32 %v1972_v1, %v2048_v28  ;;  %v2068_v36 = vld [vmem:[%s2008_s22 + $0x139] sm:$0xff]  ;;  %v2079_v40 = vld [vmem:[%s2008_s22 + $0x151] sm:$0xff]  ;;  %v632_v46 = vmul.f32 %v1988_v4, %v2065_v35  ;;  %v927_v52 = vmul.f32 %v2003_v7, %v2076_v39 }
  0x16   : > { %3274 = vst [vmem:[#allocation5_spill] sm:$0xff] %v2051_v29  ;;  %v435_v33 = vmul.f32 %v1977_v2, %v2051_v29  ;;  %v2062_v34 = vld [vmem:[%s2008_s22 + $0x122] sm:$0xff]  ;;  %v2073_v38 = vld [vmem:[%s2008_s22 + $0x13a] sm:$0xff]  ;;  %v730_v47 = vmul.f32 %v1993_v5, %v2068_v36  ;;  %v2095_v48 = vld [vmem:[%s2008_s22 + $0x152] sm:$0xff]  ;;  %v2114_v60 = vmul.f32 %v2013_v8, %v2079_v40 }
  0x17   : > { %v557_v30 = vadd.f32 %v525_v15, %v459_v22  ;;  %3275 = vst [vmem:[#allocation6_spill] sm:$0xff] %v2062_v34  ;;  %v533_v37 = vmul.f32 %v1982_v3, %v2062_v34  ;;  %v279_v49 = vld [vmem:[%s2008_s22] sm:$0xff]  ;;  %v828_v51 = vmul.f32 %v1998_v6, %v2073_v38  ;;  %v2107_v56 = vld [vmem:[%s2008_s22 + $0x18] sm:$0xff]  ;;  %v2121_v63 = vld [vmem:[%s2008_s22 + $0x30] sm:$0xff]  ;;  %v2128_v10 = vmul.f32 %v2018_v9, %v2095_v48 }
  0x18   : > { %v467_v45 = vadd.f32 %v435_v33, %v337_v32  ;;  %v377_v50 = vld [vmem:[%s2008_s22 + $0x1] sm:$0xff]  ;;  %v313_v53 = vmul.f32 %v1972_v1, %v279_v49  ;;  %v2110_v57 = vld [vmem:[%s2008_s22 + $0x19] sm:$0xff]  ;;  %v2124_v0 = vld [vmem:[%s2008_s22 + $0x31] sm:$0xff]  ;;  %v608_v12 = vmul.f32 %v1988_v4, %v2107_v56 }
  0x19   : > { %v656_v44 = vadd.f32 %v624_v23, %v557_v30  ;;  %v411_v54 = vmul.f32 %v1977_v2, %v377_v50  ;;  %v475_v55 = vld [vmem:[%s2008_s22 + $0x2] sm:$0xff]  ;;  %v2118_v62 = vld [vmem:[%s2008_s22 + $0x1a] sm:$0xff]  ;;  %v706_v13 = vmul.f32 %v1993_v5, %v2110_v57  ;;  %v2135_v14 = vld [vmem:[%s2008_s22 + $0x32] sm:$0xff]  ;;  %v903_v23 = vmul.f32 %v2003_v7, %v2121_v63 }
  0x1a   : > { %v565_v59 = vadd.f32 %v533_v37, %v467_v45  ;;  %v509_v61 = vmul.f32 %v1982_v3, %v475_v55  ;;  %v2138_v15 = vld [vmem:[%s2008_s22 + $0x60] sm:$0xff]  ;;  %v804_v22 = vmul.f32 %v1998_v6, %v2118_v62  ;;  %v2151_v30 = vld [vmem:[%s2008_s22 + $0x78] sm:$0xff]  ;;  %v296_v55 = vld [vmem:[%s2008_s22 + $0xc8] sm:$0xff] }
  0x1b   : > { %v754_v58 = vadd.f32 %v722_v24, %v656_v44  ;;  %v443_v11 = vadd.f32 %v411_v54, %v313_v53  ;;  %3276 = vst [vmem:[#allocation7_spill] sm:$0xff] %v2138_v15  ;;  %v2141_v16 = vld [vmem:[%s2008_s22 + $0x61] sm:$0xff]  ;;  %v2154_v32 = vld [vmem:[%s2008_s22 + $0x79] sm:$0xff]  ;;  %v321_v37 = vmul.f32 %v1972_v1, %v2138_v15  ;;  %v1001_v53 = vmul.f32 %v2013_v8, %v2124_v0 }
  0x1c   : > { %3277 = vst [vmem:[#allocation8_spill] sm:$0xff] %v2141_v16  ;;  %v664_v18 = vadd.f32 %v632_v46, %v565_v59  ;;  %v2148_v24 = vld [vmem:[%s2008_s22 + $0x62] sm:$0xff]  ;;  %v2163_v45 = vld [vmem:[%s2008_s22 + $0x7a] sm:$0xff]  ;;  %v2166_v46 = vld [vmem:[%s2008_s22 + $0x90] sm:$0xff]  ;;  %v1099_v54 = vmul.f32 %v2018_v9, %v2135_v14 }
  0x1d   : > { %v852_v17 = vadd.f32 %v820_v25, %v754_v58  ;;  %3278 = vst [vmem:[#allocation9_spill] sm:$0xff] %v2148_v24  ;;  %v541_v33 = vadd.f32 %v509_v61, %v443_v11  ;;  %v419_v25 = vmul.f32 %v1977_v2, %v2141_v16  ;;  %v517_v44 = vmul.f32 %v1982_v3, %v2148_v24  ;;  %v394_v58 = vld [vmem:[%s2008_s22 + $0xc9] sm:$0xff]  ;;  %v2186_v24 = vld [vmem:[%s3206_s2] ss:$0 sm:$0xff]  ;;  %v2201_v29 = vld [vmem:[%s2008_s22 + $0xe1] sm:$0xff] }
  0x1e   : > { %3279 = vst [vmem:[#allocation10_spill] sm:$0xff] %v2166_v46  ;;  %v762_v50 = vadd.f32 %v730_v47, %v664_v18  ;;  %v616_v11 = vmul.f32 %v1988_v4, %v2151_v30  ;;  %v2179_v47 = vld [vmem:[%s2008_s22 + $0x91] sm:$0xff]  ;;  %v428_v34 = vmul.f32 %v1977_v2, %v394_v58 }
  0x1f   : > { %v951_v49 = vadd.f32 %v919_v26, %v852_v17  ;;  %v640_v59 = vadd.f32 %v608_v12, %v541_v33  ;;  %v451_v61 = vadd.f32 %v419_v25, %v321_v37  ;;  %v714_v26 = vmul.f32 %v1993_v5, %v2154_v32  ;;  %v492_v17 = vld [vmem:[%s2008_s22 + $0xca] sm:$0xff]  ;;  %v2193_v25 = vld [vmem:[%s2008_s22 + $0xe0] sm:$0xff] }
  0x20   : > { %v860_v12 = vadd.f32 %v828_v51, %v762_v50  ;;  %v812_v33 = vmul.f32 %v1998_v6, %v2163_v45  ;;  %v911_v37 = vmul.f32 %v2003_v7, %v2166_v46  ;;  %3280 = vst [vmem:[#allocation11_spill] sm:$0xff] %v2193_v25  ;;  %v2207_v50 = vld [vmem:[%s3207_s3] ss:$0 sm:$0xff]  ;;  %v2221_v46 = vld [vmem:[%s2008_s22 + $0x128] sm:$0xff] }
  0x21   : > { %v1049_v18 = vadd.f32 %v2045_v27, %v951_v49  ;;  %v738_v16 = vadd.f32 %v706_v13, %v640_v59  ;;  %v549_v15 = vadd.f32 %v517_v44, %v451_v61  ;;  %v2196_v27 = vld [vmem:[%s2008_s22 + $0x92] sm:$0xff]  ;;  %v330_v49 = vmul.f32 %v1972_v1, %v296_v55  ;;  %v2213_v61 = vld [vmem:[%s2008_s22 + $0xe2] sm:$0xff]  ;;  %3283 = vst [vmem:[#allocation14_spill] sm:$0xff] %v2221_v46 }
  0x22   : > { %3281 = vst [vmem:[#allocation12_spill] sm:$0xff] %v2196_v27  ;;  %v959_v13 = vadd.f32 %v927_v52, %v860_v12  ;;  %v1009_v44 = vmul.f32 %v2013_v8, %v2179_v47  ;;  %v526_v59 = vmul.f32 %v1982_v3, %v492_v17  ;;  %v1107_v17 = vmul.f32 %v2018_v9, %v2196_v27 }
  0x23   : > { %v1147_v51 = vadd.f32 %v2055_v31, %v1049_v18  ;;  %v836_v55 = vadd.f32 %v804_v22, %v738_v16  ;;  %v648_v58 = vadd.f32 %v616_v11, %v549_v15  ;;  %v460_v28 = vadd.f32 %v428_v34, %v330_v49  ;;  %v2218_v18 = vld [vmem:[%s2008_s22 + $0xf8] sm:$0xff]  ;;  %v2230_v15 = vld [vmem:[%s2008_s22 + $0x129] sm:$0xff] }
  0x24   : > { %v625_v31 = vmul.f32 %v1988_v4, %v2193_v25  ;;  %3282 = vst [vmem:[#allocation13_spill] sm:$0xff] %v2218_v18  ;;  %v1057_v12 = vadd.f32 %v2114_v60, %v959_v13  ;;  %v723_v16 = vmul.f32 %v1993_v5, %v2201_v29  ;;  %v821_v49 = vmul.f32 %v1998_v6, %v2213_v61  ;;  %v2235_v25 = vld [vmem:[%s2008_s22 + $0x12a] sm:$0xff] }
  0x25   : > { %v1183_v52 = vmul.f32 %v2186_v24, %v1147_v51  ;;  %3284 = vst [vmem:[#allocation15_spill] sm:$0xff] %v2230_v15  ;;  %v935_v34 = vadd.f32 %v903_v23, %v836_v55  ;;  %v746_v22 = vadd.f32 %v714_v26, %v648_v58  ;;  %v558_v11 = vadd.f32 %v526_v59, %v460_v28  ;;  %v2238_v51 = vld [vmem:[%s2008_s22 + $0x140] sm:$0xff] }
  0x26   : > { %3285 = vst [vmem:[#allocation16_spill] sm:$0xff] %v2235_v25  ;;  %v1155_v13 = vadd.f32 %v2128_v10, %v1057_v12  ;;  %v920_v27 = vmul.f32 %v2003_v7, %v2218_v18  ;;  %v338_v23 = vmul.f32 %v1972_v1, %v2221_v46  ;;  %v2247_v55 = vld [vmem:[%s2008_s22 + $0xf9] sm:$0xff]  ;;  %v436_v58 = vmul.f32 %v1977_v2, %v2230_v15  ;;  %v2263_v15 = vld [vmem:[%s2008_s22 + $0x142] sm:$0xff] }
  0x27   : > { %3286 = vst [vmem:[#allocation17_spill] sm:$0xff] %v2238_v51  ;;  %v1219_v60 = vadd.f32 %v2207_v50, %v1183_v52  ;;  %v1033_v28 = vadd.f32 %v1001_v53, %v935_v34  ;;  %v844_v26 = vadd.f32 %v812_v33, %v746_v22  ;;  %v657_v59 = vadd.f32 %v625_v31, %v558_v11  ;;  %v2252_v52 = vld [vmem:[%s2008_s22 + $0x141] sm:$0xff] }
  0x28   : > { %3287 = vst [vmem:[#allocation18_spill] sm:$0xff] %v2247_v55  ;;  %v1191_v12 = vmul.f32 %v2186_v24, %v1155_v13  ;;  %v534_v18 = vmul.f32 %v1982_v3, %v2235_v25  ;;  %v633_v53 = vmul.f32 %v1988_v4, %v2238_v51  ;;  %v2260_v22 = vld [vmem:[%s2008_s22 + $0xfa] sm:$0xff]  ;;  %v468_v11 = vadd.f32 %v436_v58, %v338_v23 }
  0x29   : > { %3288 = vst [vmem:[#allocation19_spill] sm:$0xff] %v2252_v52  ;;  %v1251_v10 = vmax.f32 %v1219_v60, 0.0  ;;  %v1131_v34 = vadd.f32 %v1099_v54, %v1033_v28  ;;  %v943_v33 = vadd.f32 %v911_v37, %v844_v26  ;;  %v755_v31 = vadd.f32 %v723_v16, %v657_v59  ;;  %v280_v60 = vld [vmem:[%s2008_s22 + $0x8] sm:$0xff]  ;;  %v2273_v37 = vld [vmem:[%s2008_s22 + $0x158] sm:$0xff] }
  0x2a   : > { %3289 = vst [vmem:[#allocation20_spill] sm:$0xff] %v2260_v22  ;;  %v1227_v13 = vadd.f32 %v2207_v50, %v1191_v12  ;;  %v1018_v25 = vmul.f32 %v2013_v8, %v2247_v55  ;;  %v731_v54 = vmul.f32 %v1993_v5, %v2252_v52  ;;  %v2277_v16 = vadd.f32 %v2085_v42, %v2082_v41  ;;  %v2281_v58 = vld [vmem:[%s2008_s22 + $0x159] sm:$0xff]  ;;  %v476_v12 = vld [vmem:[%s2008_s22 + $0xa] sm:$0xff] }
  0x2b   : > { %1853 = vmatmul.msk.f32.vlgmr.msra.gmra.mxu2 %vm1268_vm0, %v1251_v10  ;;  %3290 = vst [vmem:[#allocation21_spill] sm:$0xff] %v2273_v37  ;;  %v1167_v23 = vmul.f32 %v2186_v24, %v1131_v34  ;;  %v1041_v28 = vadd.f32 %v1009_v44, %v943_v33  ;;  %v853_v26 = vadd.f32 %v821_v49, %v755_v31  ;;  %v378_v10 = vld [vmem:[%s2008_s22 + $0x9] sm:$0xff]  ;;  %v2290_v41 = vld [vmem:[%s2008_s22 + $0x15a] sm:$0xff] }
  0x2c   : > { %v566_v59 = vadd.f32 %v534_v18, %v468_v11  ;;  %3291 = vst [vmem:[#allocation22_spill] sm:$0xff] %v2281_v58  ;;  %v1259_v46 = vmax.f32 %v1227_v13, 0.0  ;;  %v1116_v52 = vmul.f32 %v2018_v9, %v2260_v22  ;;  %v829_v51 = vmul.f32 %v1998_v6, %v2263_v15  ;;  %v2294_v44 = vld [vmem:[%s2008_s22 + $0x20] sm:$0xff] }
  0x2d   : > { %3292 = vst [vmem:[#allocation23_spill] sm:$0xff] %v2290_v41  ;;  %v314_v42 = vmul.f32 %v1972_v1, %v280_v60  ;;  %v1203_v18 = vadd.f32 %v2207_v50, %v1167_v23  ;;  %v1139_v49 = vadd.f32 %v1107_v17, %v1041_v28  ;;  %v952_v34 = vadd.f32 %v920_v27, %v853_v26  ;;  %v2298_v31 = vld [vmem:[%s2008_s22 + $0x21] sm:$0xff]  ;;  %v2315_v26 = vld [vmem:[%s2008_s22 + $0x69] sm:$0xff] }
  0x2e   : > { %3293 = vst [vmem:[#allocation24_spill] sm:$0xff] %v2294_v44  ;;  %v665_v33 = vadd.f32 %v633_v53, %v566_v59  ;;  %1861 = vmatmul.msk.f32.vlgmr.msra.gmra.mxu3 %vm1268_vm0, %v1259_v46  ;;  %v928_v11 = vmul.f32 %v2003_v7, %v2273_v37  ;;  %v1026_v60 = vmul.f32 %v2013_v8, %v2281_v58  ;;  %v2308_v22 = vld [vmem:[%s2008_s22 + $0x22] sm:$0xff]  ;;  %v2318_v59 = vld [vmem:[%s2008_s22 + $0x6a] sm:$0xff]  ;;  %v2340_v58 = vld [vmem:[%s2008_s22 + $0x3a] sm:$0xff] }
  0x2f   : > { %3294 = vst [vmem:[#allocation25_spill] sm:$0xff] %v2298_v31  ;;  %v412_v13 = vmul.f32 %v1977_v2, %v378_v10  ;;  %v510_v23 = vmul.f32 %v1982_v3, %v476_v12  ;;  %v1235_v17 = vmax.f32 %v1203_v18, 0.0  ;;  %v1175_v27 = vmul.f32 %v2186_v24, %v1139_v49  ;;  %v2312_v28 = vld [vmem:[%s2008_s22 + $0x68] sm:$0xff]  ;;  %v2327_v49 = vld [vmem:[%s2008_s22 + $0x38] sm:$0xff] }
  0x30   : > { %3295 = vst [vmem:[#allocation26_spill] sm:$0xff] %v2308_v22  ;;  %v1050_v53 = vadd.f32 %v1018_v25, %v952_v34  ;;  %v763_v46 = vadd.f32 %v731_v54, %v665_v33  ;;  %v1124_v10 = vmul.f32 %v2018_v9, %v2290_v41  ;;  %v609_v18 = vmul.f32 %v1988_v4, %v2294_v44 }
  0x31   : > { %3296 = vst [vmem:[#allocation27_spill] sm:$0xff] %v2312_v28  ;;  %v444_v12 = vadd.f32 %v412_v13, %v314_v42  ;;  %v707_v25 = vmul.f32 %v1993_v5, %v2298_v31  ;;  %1837 = vmatmul.msk.f32.vlgmr.msra.gmra.mxu0 %vm1268_vm0, %v1235_v17  ;;  %v1211_v54 = vadd.f32 %v2207_v50, %v1175_v27  ;;  %v2334_v42 = vld [vmem:[%s2008_s22 + $0x39] sm:$0xff] }
  0x32   : > { %3297 = vst [vmem:[#allocation28_spill] sm:$0xff] %v2315_v26  ;;  %v1148_v34 = vadd.f32 %v1116_v52, %v1050_v53  ;;  %v861_v33 = vadd.f32 %v829_v51, %v763_v46  ;;  %v805_v41 = vmul.f32 %v1998_v6, %v2308_v22  ;;  %v2337_v13 = vld [vmem:[%s2008_s22 + $0x80] sm:$0xff]  ;;  %v322_v31 = vmul.f32 %v1972_v1, %v2312_v28 }
  0x33   : > { %3298 = vst [vmem:[#allocation29_spill] sm:$0xff] %v2318_v59  ;;  %v542_v44 = vadd.f32 %v510_v23, %v444_v12  ;;  %v420_v17 = vmul.f32 %v1977_v2, %v2315_v26  ;;  %v518_v52 = vmul.f32 %v1982_v3, %v2318_v59  ;;  %v2349_v51 = vld [vmem:[%s2008_s22 + $0x81] sm:$0xff]  ;;  %v1243_v27 = vmax.f32 %v1211_v54, 0.0 }
  0x34   : > { %3299 = vst [vmem:[#allocation30_spill] sm:$0xff] %v2327_v49  ;;  %v1184_v53 = vmul.f32 %v2186_v24, %v1148_v34  ;;  %v960_v46 = vadd.f32 %v928_v11, %v861_v33  ;;  %v904_v23 = vmul.f32 %v2003_v7, %v2327_v49  ;;  %v2355_v12 = vld [vmem:[%s2008_s22 + $0x82] sm:$0xff]  ;;  %v1002_v26 = vmul.f32 %v2013_v8, %v2334_v42 }
  0x35   : > { %3300 = vst [vmem:[#allocation31_spill] sm:$0xff] %v2334_v42  ;;  %v641_v28 = vadd.f32 %v609_v18, %v542_v44  ;;  %v452_v22 = vadd.f32 %v420_v17, %v322_v31  ;;  %v617_v59 = vmul.f32 %v1988_v4, %v2337_v13  ;;  %1845 = vmatmul.msk.f32.vlgmr.msra.gmra.mxu1 %vm1268_vm0, %v1243_v27  ;;  %v2368_v44 = vld [vmem:[%s2008_s22 + $0x98] sm:$0xff] }
  0x36   : > { %3301 = vst [vmem:[#allocation32_spill] sm:$0xff] %v2337_v13  ;;  %v1220_v54 = vadd.f32 %v2207_v50, %v1184_v53  ;;  %v1058_v34 = vadd.f32 %v1026_v60, %v960_v46  ;;  %v1100_v11 = vmul.f32 %v2018_v9, %v2340_v58  ;;  %v715_v33 = vmul.f32 %v1993_v5, %v2349_v51  ;;  %v2371_v18 = vld [vmem:[%s2008_s22 + $0x99] sm:$0xff] }
  0x37   : > { %3302 = vst [vmem:[#allocation33_spill] sm:$0xff] %v2340_v58  ;;  %v739_v31 = vadd.f32 %v707_v25, %v641_v28  ;;  %v550_v17 = vadd.f32 %v518_v52, %v452_v22  ;;  %v813_v13 = vmul.f32 %v1998_v6, %v2355_v12  ;;  %v2376_v27 = vld [vmem:[%s2008_s22 + $0x9a] sm:$0xff]  ;;  %v559_v60 = vadd.f32 %v2088_v43, %v2277_v16 }
  0x38   : > { %3303 = vst [vmem:[#allocation34_spill] sm:$0xff] %v2349_v51  ;;  %v1252_v53 = vmax.f32 %v1220_v54, 0.0  ;;  %v1156_v46 = vadd.f32 %v1124_v10, %v1058_v34  ;;  %v626_v58 = vmul.f32 %v1988_v4, %v2030_v19  ;;  %v724_v51 = vmul.f32 %v1993_v5, %v2033_v20  ;;  %v2398_v34 = vld [vmem:[%s2008_s22 + $0x109] sm:$0xff] }
  0x39   : > { %3304 = vst [vmem:[#allocation35_spill] sm:$0xff] %v2355_v12  ;;  %v837_v28 = vadd.f32 %v805_v41, %v739_v31  ;;  %v649_v22 = vadd.f32 %v617_v59, %v550_v17  ;;  %v912_v25 = vmul.f32 %v2003_v7, %v2368_v44  ;;  %v1010_v52 = vmul.f32 %v2013_v8, %v2371_v18  ;;  %v2389_v12 = vld [vmem:[%s2008_s22 + $0x108] sm:$0xff] }
  0x3a   : > { %3305 = vst [vmem:[#allocation36_spill] sm:$0xff] %v2368_v44  ;;  %1854 = vmatmul.msk.f32.gmra.mxu2 %vm1268_vm0, %v1252_v53  ;;  %v1192_v43 = vmul.f32 %v2186_v24, %v1156_v46  ;;  %v1108_v16 = vmul.f32 %v2018_v9, %v2376_v27  ;;  %v658_v10 = vadd.f32 %v626_v58, %v559_v60  ;;  %v2401_v31 = vld [vmem:[%s2008_s22 + $0x10a] sm:$0xff] }
  0x3b   : > { %3306 = vst [vmem:[#allocation37_spill] sm:$0xff] %v2371_v18  ;;  %v822_v41 = vmul.f32 %v1998_v6, %v2036_v21  ;;  %v936_v59 = vadd.f32 %v904_v23, %v837_v28  ;;  %v747_v54 = vadd.f32 %v715_v33, %v649_v22  ;;  %v339_v17 = vmul.f32 %v1972_v1, %v2065_v35 }
  0x3c   : > { %3307 = vst [vmem:[#allocation38_spill] sm:$0xff] %v2376_v27  ;;  %v437_v53 = vmul.f32 %v1977_v2, %v2068_v36  ;;  %v1228_v46 = vadd.f32 %v2207_v50, %v1192_v43  ;;  %v756_v20 = vadd.f32 %v724_v51, %v658_v10  ;;  %v921_v58 = vmul.f32 %v2003_v7, %v2389_v12 }
  0x3d   : > { %3308 = vst [vmem:[#allocation39_spill] sm:$0xff] %v2389_v12  ;;  %v535_v23 = vmul.f32 %v1982_v3, %v2073_v38  ;;  %v1034_v33 = vadd.f32 %v1002_v26, %v936_v59  ;;  %v845_v60 = vadd.f32 %v813_v13, %v747_v54  ;;  %v634_v35 = vmul.f32 %v1988_v4, %v2076_v39  ;;  %v2421_v26 = vld [vmem:[%s2008_s22 + $0x168] sm:$0xff] }
  0x3e   : > { %v469_v28 = vadd.f32 %v437_v53, %v339_v17  ;;  %v1260_v22 = vmax.f32 %v1228_v46, 0.0  ;;  %v854_v21 = vadd.f32 %v822_v41, %v756_v20  ;;  %v1019_v36 = vmul.f32 %v2013_v8, %v2398_v34  ;;  %v2427_v41 = vld [vmem:[%s2008_s22 + $0x169] sm:$0xff] }
  0x3f   : > { %v1117_v51 = vmul.f32 %v2018_v9, %v2401_v31  ;;  %v1132_v43 = vadd.f32 %v1100_v11, %v1034_v33  ;;  %v944_v10 = vadd.f32 %v912_v25, %v845_v60  ;;  %v732_v38 = vmul.f32 %v1993_v5, %v2079_v40  ;;  %v2435_v53 = vld [vmem:[%s2008_s22 + $0x16a] sm:$0xff] }
  0x40   : > { %v567_v12 = vadd.f32 %v535_v23, %v469_v28  ;;  %1862 = vmatmul.msk.f32.gmra.mxu3 %vm1268_vm0, %v1260_v22  ;;  %v953_v13 = vadd.f32 %v921_v58, %v854_v21  ;;  %v830_v20 = vmul.f32 %v1998_v6, %v2095_v48  ;;  %v315_v59 = vmul.f32 %v1972_v1, %v2107_v56  ;;  %v2451_v22 = vld [vmem:[%s2008_s22 + $0x48] sm:$0xff] }
  0x41   : > { %v413_v11 = vmul.f32 %v1977_v2, %v2110_v57  ;;  %v1168_v25 = vmul.f32 %v2186_v24, %v1132_v43  ;;  %v1042_v54 = vadd.f32 %v1010_v52, %v944_v10  ;;  %v511_v21 = vmul.f32 %v1982_v3, %v2118_v62 }
  0x42   : > { %v666_v17 = vadd.f32 %v634_v35, %v567_v12  ;;  %v1051_v46 = vadd.f32 %v1019_v36, %v953_v13  ;;  %v929_v58 = vmul.f32 %v2003_v7, %v2421_v26  ;;  %v610_v56 = vmul.f32 %v1988_v4, %v2121_v63  ;;  %v2458_v13 = vld [vmem:[%s2008_s22 + $0x49] sm:$0xff] }
  0x43   : > { %v445_v23 = vadd.f32 %v413_v11, %v315_v59  ;;  %v1204_v57 = vadd.f32 %v2207_v50, %v1168_v25  ;;  %v1140_v33 = vadd.f32 %v1108_v16, %v1042_v54  ;;  %v1027_v12 = vmul.f32 %v2013_v8, %v2427_v41 }
  0x44   : > { %v764_v52 = vadd.f32 %v732_v38, %v666_v17  ;;  %v1149_v60 = vadd.f32 %v1117_v51, %v1051_v46  ;;  %v1125_v62 = vmul.f32 %v2018_v9, %v2435_v53  ;;  %v708_v35 = vmul.f32 %v1993_v5, %v2124_v0 }
  0x45   : > { %v543_v28 = vadd.f32 %v511_v21, %v445_v23  ;;  %v1236_v36 = vmax.f32 %v1204_v57, 0.0  ;;  %v1176_v43 = vmul.f32 %v2186_v24, %v1140_v33  ;;  %v806_v16 = vmul.f32 %v1998_v6, %v2135_v14  ;;  %v3309_v23 = vld [vmem:[#allocation10_spill] sm:$0xff] }
  0x46   : > { %v862_v10 = vadd.f32 %v830_v20, %v764_v52  ;;  %v1185_v38 = vmul.f32 %v2186_v24, %v1149_v60  ;;  %v323_v59 = vmul.f32 %v1972_v1, %v2151_v30  ;;  %v421_v11 = vmul.f32 %v1977_v2, %v2154_v32  ;;  %v2472_v30 = vld [vmem:[%s2008_s22 + $0x4a] sm:$0xff] }
  0x47   : > { %v642_v51 = vadd.f32 %v610_v56, %v543_v28  ;;  %1838 = vmatmul.msk.f32.gmra.mxu0 %vm1268_vm0, %v1236_v36  ;;  %v1212_v25 = vadd.f32 %v2207_v50, %v1176_v43  ;;  %v905_v54 = vmul.f32 %v2003_v7, %v2451_v22  ;;  %v519_v17 = vmul.f32 %v1982_v3, %v2163_v45  ;;  %v2481_v36 = vld [vmem:[%s2008_s22 + $0xa8] sm:$0xff] }
  0x48   : > { %v961_v20 = vadd.f32 %v929_v58, %v862_v10  ;;  %v1221_v21 = vadd.f32 %v2207_v50, %v1185_v38  ;;  %v453_v32 = vadd.f32 %v421_v11, %v323_v59  ;;  %v618_v56 = vmul.f32 %v1988_v4, %v3309_v23  ;;  %v2487_v10 = vld [vmem:[%s2008_s22 + $0xa9] sm:$0xff] }
  0x49   : > { %v740_v46 = vadd.f32 %v708_v35, %v642_v51  ;;  %v1244_v57 = vmax.f32 %v1212_v25, 0.0  ;;  %v1003_v58 = vmul.f32 %v2013_v8, %v2458_v13  ;;  %v716_v45 = vmul.f32 %v1993_v5, %v2179_v47  ;;  %v3311_v38 = vld [vmem:[#allocation11_spill] sm:$0xff]  ;;  %v3312_v25 = vld [vmem:[#allocation12_spill] sm:$0xff] }
  0x4a   : > { %v1059_v33 = vadd.f32 %v1027_v12, %v961_v20  ;;  %v1253_v52 = vmax.f32 %v1221_v21, 0.0  ;;  %v551_v28 = vadd.f32 %v519_v17, %v453_v32  ;;  %v1101_v43 = vmul.f32 %v2018_v9, %v2472_v30  ;;  %v2490_v12 = vld [vmem:[%s2008_s22 + $0xaa] sm:$0xff]  ;;  %v3313_v32 = vld [vmem:[#allocation13_spill] sm:$0xff] }
  0x4b   : > { %v838_v60 = vadd.f32 %v806_v16, %v740_v46  ;;  %1846 = vmatmul.msk.f32.gmra.mxu1 %vm1268_vm0, %v1244_v57  ;;  %3310 = vst [vmem:[#allocation10_spill] sm:$0xff] %v2490_v12  ;;  %v332_v16 = vmul.f32 %v1972_v1, %v3311_v38  ;;  %v430_v51 = vmul.f32 %v1977_v2, %v2201_v29 }
  0x4c   : > { %v1157_v35 = vadd.f32 %v1125_v62, %v1059_v33  ;;  %1855 = vmatmul.msk.f32.gmra.mxu2 %vm1268_vm0, %v1253_v52  ;;  %v650_v11 = vadd.f32 %v618_v56, %v551_v28  ;;  %v814_v62 = vmul.f32 %v1998_v6, %v3312_v25  ;;  %v528_v20 = vmul.f32 %v1982_v3, %v2213_v61  ;;  %v2511_v61 = vld [vmem:[%s2008_s22 + $0x110] sm:$0xff] }
  0x4d   : > { %v937_v59 = vadd.f32 %v905_v54, %v838_v60  ;;  %v913_v21 = vmul.f32 %v2003_v7, %v2481_v36  ;;  %v462_v46 = vadd.f32 %v430_v51, %v332_v16  ;;  %v627_v29 = vmul.f32 %v1988_v4, %v3313_v32  ;;  %3314 = vst [vmem:[#allocation11_spill] sm:$0xff] %v2511_v61  ;;  %v2522_v51 = vld [vmem:[%s2008_s22 + $0x112] sm:$0xff] }
  0x4e   : > { %v1193_v17 = vmul.f32 %v2186_v24, %v1157_v35  ;;  %v748_v54 = vadd.f32 %v716_v45, %v650_v11  ;;  %v1011_v56 = vmul.f32 %v2013_v8, %v2487_v10  ;;  %v1109_v33 = vmul.f32 %v2018_v9, %v2490_v12  ;;  %v3315_v35 = vld [vmem:[#allocation17_spill] sm:$0xff]  ;;  %v3319_v12 = vld [vmem:[#allocation20_spill] sm:$0xff] }
  0x4f   : > { %v1035_v57 = vadd.f32 %v1003_v58, %v937_v59  ;;  %v560_v60 = vadd.f32 %v528_v20, %v462_v46  ;;  %v725_v28 = vmul.f32 %v1993_v5, %v2247_v55  ;;  %v340_v38 = vmul.f32 %v1972_v1, %v3315_v35  ;;  %v2519_v45 = vld [vmem:[%s2008_s22 + $0x111] sm:$0xff]  ;;  %3317 = vst [vmem:[#allocation17_spill] sm:$0xff] %v2522_v51  ;;  %v3318_v59 = vld [vmem:[#allocation19_spill] sm:$0xff] }
  0x50   : > { %v1229_v52 = vadd.f32 %v2207_v50, %v1193_v17  ;;  %v846_v58 = vadd.f32 %v814_v62, %v748_v54  ;;  %3316 = vst [vmem:[#allocation12_spill] sm:$0xff] %v2519_v45  ;;  %v438_v11 = vmul.f32 %v1977_v2, %v3318_v59  ;;  %v536_v17 = vmul.f32 %v1982_v3, %v2263_v15 }
  0x51   : > { %v1133_v16 = vadd.f32 %v1101_v43, %v1035_v57  ;;  %v659_v46 = vadd.f32 %v627_v29, %v560_v60  ;;  %v823_v55 = vmul.f32 %v1998_v6, %v3319_v12  ;;  %v922_v43 = vmul.f32 %v2003_v7, %v2511_v61  ;;  %v3320_v60 = vld [vmem:[#allocation22_spill] sm:$0xff]  ;;  %v2543_v61 = vld [vmem:[%s2008_s22 + $0x170] sm:$0xff] }
  0x52   : > { %v1261_v20 = vmax.f32 %v1229_v52, 0.0  ;;  %v945_v57 = vadd.f32 %v913_v21, %v846_v58  ;;  %v470_v54 = vadd.f32 %v438_v11, %v340_v38  ;;  %v635_v35 = vmul.f32 %v1988_v4, %v2273_v37  ;;  %v2547_v58 = vld [vmem:[%s2008_s22 + $0x171] sm:$0xff]  ;;  %v3326_v12 = vld [vmem:[#allocation26_spill] sm:$0xff] }
  0x53   : > { %v1169_v62 = vmul.f32 %v2186_v24, %v1133_v16  ;;  %v757_v15 = vadd.f32 %v725_v28, %v659_v46  ;;  %v1020_v29 = vmul.f32 %v2013_v8, %v2519_v45  ;;  %v1118_v52 = vmul.f32 %v2018_v9, %v2522_v51  ;;  %3321 = vst [vmem:[#allocation19_spill] sm:$0xff] %v2547_v58  ;;  %v3322_v11 = vld [vmem:[#allocation24_spill] sm:$0xff]  ;;  %v3323_v46 = vld [vmem:[#allocation23_spill] sm:$0xff]  ;;  %v3325_v51 = vld [vmem:[#allocation25_spill] sm:$0xff] }
  0x54   : > { %1863 = vmatmul.msk.f32.gmra.mxu3 %vm1268_vm0, %v1261_v20  ;;  %v733_v59 = vmul.f32 %v1993_v5, %v3320_v60  ;;  %v1043_v38 = vadd.f32 %v1011_v56, %v945_v57  ;;  %v568_v16 = vadd.f32 %v536_v17, %v470_v54  ;;  %v316_v28 = vmul.f32 %v1972_v1, %v3322_v11  ;;  %v2554_v45 = vld [vmem:[%s2008_s22 + $0x172] sm:$0xff] }
  0x55   : > { %v1205_v21 = vadd.f32 %v2207_v50, %v1169_v62  ;;  %v855_v20 = vadd.f32 %v823_v55, %v757_v15  ;;  %v831_v37 = vmul.f32 %v1998_v6, %v3323_v46  ;;  %3324 = vst [vmem:[#allocation24_spill] sm:$0xff] %v2554_v45  ;;  %v414_v60 = vmul.f32 %v1977_v2, %v3325_v51 }
  0x56   : > { %v512_v32 = vmul.f32 %v1982_v3, %v3326_v12  ;;  %v1141_v17 = vadd.f32 %v1109_v33, %v1043_v38  ;;  %v667_v62 = vadd.f32 %v635_v35, %v568_v16  ;;  %v930_v57 = vmul.f32 %v2003_v7, %v2543_v61  ;;  %v2573_v38 = vld [vmem:[%s2008_s22 + $0x50] sm:$0xff] }
  0x57   : > { %v1237_v56 = vmax.f32 %v1205_v21, 0.0  ;;  %v954_v55 = vadd.f32 %v922_v43, %v855_v20  ;;  %v1028_v54 = vmul.f32 %v2013_v8, %v2547_v58  ;;  %v446_v15 = vadd.f32 %v414_v60, %v316_v28  ;;  %v2576_v16 = vld [vmem:[%s2008_s22 + $0x51] sm:$0xff]  ;;  %v3328_v20 = vld [vmem:[#allocation34_spill] sm:$0xff] }
  0x58   : > { %v611_v11 = vmul.f32 %v1988_v4, %v2327_v49  ;;  %v1177_v12 = vmul.f32 %v2186_v24, %v1141_v17  ;;  %v765_v51 = vadd.f32 %v733_v59, %v667_v62  ;;  %v1126_v33 = vmul.f32 %v2018_v9, %v2554_v45  ;;  %v3327_v60 = vld [vmem:[#allocation32_spill] sm:$0xff]  ;;  %v3329_v62 = vld [vmem:[#allocation33_spill] sm:$0xff] }
  0x59   : > { %1839 = vmatmul.msk.f32.gmra.mxu0 %vm1268_vm0, %v1237_v56  ;;  %v709_v35 = vmul.f32 %v1993_v5, %v2334_v42  ;;  %v1052_v21 = vadd.f32 %v1020_v29, %v954_v55  ;;  %v544_v43 = vadd.f32 %v512_v32, %v446_v15  ;;  %v324_v28 = vmul.f32 %v1972_v1, %v3327_v60  ;;  %v3330_v42 = vld [vmem:[#allocation35_spill] sm:$0xff] }
  0x5a   : > { %v422_v56 = vmul.f32 %v1977_v2, %v3328_v20  ;;  %v1213_v59 = vadd.f32 %v2207_v50, %v1177_v12  ;;  %v863_v17 = vadd.f32 %v831_v37, %v765_v51  ;;  %v807_v49 = vmul.f32 %v1998_v6, %v3329_v62 }
  0x5b   : > { %v520_v32 = vmul.f32 %v1982_v3, %v3330_v42  ;;  %v1150_v29 = vadd.f32 %v1118_v52, %v1052_v21  ;;  %v643_v55 = vadd.f32 %v611_v11, %v544_v43  ;;  %v619_v60 = vmul.f32 %v1988_v4, %v2368_v44  ;;  %v2595_v42 = vld [vmem:[%s2008_s22 + $0x52] sm:$0xff] }
  0x5c   : > { %v454_v15 = vadd.f32 %v422_v56, %v324_v28  ;;  %v1245_v45 = vmax.f32 %v1213_v59, 0.0  ;;  %v962_v58 = vadd.f32 %v930_v57, %v863_v17  ;;  %v906_v20 = vmul.f32 %v2003_v7, %v2573_v38  ;;  %v2603_v43 = vld [vmem:[%s2008_s22 + $0xb0] sm:$0xff]  ;;  %v3331_v56 = vld [vmem:[#allocation2_spill] sm:$0xff] }
  0x5d   : > { %v1004_v37 = vmul.f32 %v2013_v8, %v2576_v16  ;;  %v1186_v12 = vmul.f32 %v2186_v24, %v1150_v29  ;;  %v741_v51 = vadd.f32 %v709_v35, %v643_v55  ;;  %v717_v11 = vmul.f32 %v1993_v5, %v2371_v18  ;;  %v2611_v29 = vld [vmem:[%s2008_s22 + $0xb1] sm:$0xff] }
  0x5e   : > { %v552_v52 = vadd.f32 %v520_v32, %v454_v15  ;;  %1847 = vmatmul.msk.f32.gmra.mxu1 %vm1268_vm0, %v1245_v45  ;;  %v1060_v21 = vadd.f32 %v1028_v54, %v962_v58  ;;  %v815_v57 = vmul.f32 %v1998_v6, %v2376_v27  ;;  %v333_v28 = vmul.f32 %v1972_v1, %v2030_v19  ;;  %v3332_v45 = vld [vmem:[#allocation3_spill] sm:$0xff] }
  0x5f   : > { %v431_v35 = vmul.f32 %v1977_v2, %v3331_v56  ;;  %v1222_v59 = vadd.f32 %v2207_v50, %v1186_v12  ;;  %v839_v17 = vadd.f32 %v807_v49, %v741_v51  ;;  %v529_v58 = vmul.f32 %v1982_v3, %v3332_v45  ;;  %v3333_v27 = vld [vmem:[#allocation39_spill] sm:$0xff]  ;;  %v2625_v51 = vld [vmem:[%s2008_s22 + $0xb2] sm:$0xff] }
  0x60   : > { %v651_v32 = vadd.f32 %v619_v60, %v552_v52  ;;  %v1158_v54 = vadd.f32 %v1126_v33, %v1060_v21  ;;  %v1102_v55 = vmul.f32 %v2018_v9, %v2595_v42  ;;  %v628_v19 = vmul.f32 %v1988_v4, %v3333_v27 }
  0x61   : > { %v463_v15 = vadd.f32 %v431_v35, %v333_v28  ;;  %v1254_v18 = vmax.f32 %v1222_v59, 0.0  ;;  %v938_v56 = vadd.f32 %v906_v20, %v839_v17  ;;  %v914_v49 = vmul.f32 %v2003_v7, %v2603_v43 }
  0x62   : > { %v749_v44 = vadd.f32 %v717_v11, %v651_v32  ;;  %v1194_v60 = vmul.f32 %v2186_v24, %v1158_v54  ;;  %v1012_v12 = vmul.f32 %v2013_v8, %v2611_v29  ;;  %v726_v52 = vmul.f32 %v1993_v5, %v2398_v34 }
  0x63   : > { %v561_v33 = vadd.f32 %v529_v58, %v463_v15  ;;  %1856 = vmatmul.msk.f32.gmra.mxu2 %vm1268_vm0, %v1254_v18  ;;  %v1036_v21 = vadd.f32 %v1004_v37, %v938_v56  ;;  %v824_v20 = vmul.f32 %v1998_v6, %v2401_v31  ;;  %v341_v11 = vmul.f32 %v1972_v1, %v2076_v39  ;;  %v3334_v37 = vld [vmem:[#allocation4_spill] sm:$0xff]  ;;  %v3336_v56 = vld [vmem:[#allocation6_spill] sm:$0xff] }
  0x64   : > { %v847_v28 = vadd.f32 %v815_v57, %v749_v44  ;;  %v1230_v35 = vadd.f32 %v2207_v50, %v1194_v60  ;;  %v439_v17 = vmul.f32 %v1977_v2, %v2079_v40  ;;  %v537_v32 = vmul.f32 %v1982_v3, %v2095_v48  ;;  %v3335_v48 = vld [vmem:[#allocation5_spill] sm:$0xff]  ;;  %v2651_v60 = vld [vmem:[%s2008_s22 + $0x180] sm:$0xff] }
  0x65   : > { %v660_v59 = vadd.f32 %v628_v19, %v561_v33  ;;  %v1134_v45 = vadd.f32 %v1102_v55, %v1036_v21  ;;  %v1110_v44 = vmul.f32 %v2018_v9, %v2625_v51  ;;  %v923_v57 = vmul.f32 %v2003_v7, %v3334_v37 }
  0x66   : > { %v946_v18 = vadd.f32 %v914_v49, %v847_v28  ;;  %v1262_v58 = vmax.f32 %v1230_v35, 0.0  ;;  %v471_v54 = vadd.f32 %v439_v17, %v341_v11  ;;  %v636_v15 = vmul.f32 %v1988_v4, %v2421_v26  ;;  %v2660_v35 = vld [vmem:[%s2008_s22 + $0x181] sm:$0xff] }
  0x67   : > { %v758_v39 = vadd.f32 %v726_v52, %v660_v59  ;;  %v1170_v40 = vmul.f32 %v2186_v24, %v1134_v45  ;;  %v1021_v55 = vmul.f32 %v2013_v8, %v3335_v48  ;;  %v1119_v49 = vmul.f32 %v2018_v9, %v3336_v56  ;;  %v2663_v59 = vld [vmem:[%s2008_s22 + $0x182] sm:$0xff] }
  0x68   : > { %v1044_v19 = vadd.f32 %v1012_v12, %v946_v18  ;;  %1864 = vmatmul.msk.f32.gmra.mxu3 %vm1268_vm0, %v1262_v58  ;;  %v569_v52 = vadd.f32 %v537_v32, %v471_v54  ;;  %v734_v21 = vmul.f32 %v1993_v5, %v2427_v41  ;;  %v317_v28 = vmul.f32 %v1972_v1, %v2121_v63 }
  0x69   : > { %v856_v33 = vadd.f32 %v824_v20, %v758_v39  ;;  %v1206_v12 = vadd.f32 %v2207_v50, %v1170_v40  ;;  %v415_v17 = vmul.f32 %v1977_v2, %v2124_v0  ;;  %v513_v20 = vmul.f32 %v1982_v3, %v2135_v14 }
  0x6a   : > { %v1142_v11 = vadd.f32 %v1110_v44, %v1044_v19  ;;  %v668_v45 = vadd.f32 %v636_v15, %v569_v52  ;;  %v832_v18 = vmul.f32 %v1998_v6, %v2435_v53  ;;  %v931_v63 = vmul.f32 %v2003_v7, %v2651_v60 }
  0x6b   : > { %v955_v32 = vadd.f32 %v923_v57, %v856_v33  ;;  %v1238_v37 = vmax.f32 %v1206_v12, 0.0  ;;  %v447_v58 = vadd.f32 %v415_v17, %v317_v28  ;;  %v612_v39 = vmul.f32 %v1988_v4, %v2451_v22 }
  0x6c   : > { %v1178_v44 = vmul.f32 %v2186_v24, %v1142_v11  ;;  %v766_v0 = vadd.f32 %v734_v21, %v668_v45  ;;  %v1029_v14 = vmul.f32 %v2013_v8, %v2660_v35  ;;  %v1127_v57 = vmul.f32 %v2018_v9, %v2663_v59  ;;  %v3337_v11 = vld [vmem:[#allocation7_spill] sm:$0xff]  ;;  %v2705_v45 = vld [vmem:[%s2008_s22 + $0xc0] sm:$0xff] }
  0x6d   : > { %v1053_v54 = vadd.f32 %v1021_v55, %v955_v32  ;;  %1840 = vmatmul.msk.f32.gmra.mxu0 %vm1268_vm0, %v1238_v37  ;;  %v545_v40 = vadd.f32 %v513_v20, %v447_v58  ;;  %v710_v19 = vmul.f32 %v1993_v5, %v2458_v13  ;;  %v325_v48 = vmul.f32 %v1972_v1, %v3309_v23  ;;  %v3339_v20 = vld [vmem:[#allocation9_spill] sm:$0xff] }
  0x6e   : > { %v1214_v15 = vadd.f32 %v2207_v50, %v1178_v44  ;;  %v864_v55 = vadd.f32 %v832_v18, %v766_v0  ;;  %v423_v33 = vmul.f32 %v1977_v2, %v2179_v47  ;;  %v521_v52 = vmul.f32 %v1982_v3, %v3312_v25  ;;  %v3338_v47 = vld [vmem:[#allocation8_spill] sm:$0xff]  ;;  %v2709_v44 = vld [vmem:[%s2008_s22 + $0xc1] sm:$0xff] }
  0x6f   : > { %v1151_v56 = vadd.f32 %v1119_v49, %v1053_v54  ;;  %v644_v28 = vadd.f32 %v612_v39, %v545_v40  ;;  %v808_v12 = vmul.f32 %v1998_v6, %v2472_v30  ;;  %v907_v17 = vmul.f32 %v2003_v7, %v3337_v11  ;;  %v3341_v39 = vld [vmem:[#allocation10_spill] sm:$0xff] }
  0x70   : > { %v1246_v21 = vmax.f32 %v1214_v15, 0.0  ;;  %v963_v23 = vadd.f32 %v931_v63, %v864_v55  ;;  %v455_v49 = vadd.f32 %v423_v33, %v325_v48  ;;  %v620_v2 = vmul.f32 %v1988_v4, %v2481_v36  ;;  %v2714_v4 = vld [vmem:[%s3205_s1] ss:$0 sm:$0xff]  ;;  %v2721_v54 = vld [vmem:[%s2008_s22 + $0xc2] sm:$0xff]  ;;  %v2726_v0 = vld [vmem:[%s3205_s1 + $0x1] ss:$0 sm:$0xff] }
  0x71   : > { %v1187_v1 = vmul.f32 %v2186_v24, %v1151_v56  ;;  %v742_v3 = vadd.f32 %v710_v19, %v644_v28  ;;  %v1005_v25 = vmul.f32 %v2013_v8, %v3338_v47  ;;  %v1103_v32 = vmul.f32 %v2018_v9, %v3339_v20  ;;  %v3340_v8 = vld [vmem:[#allocation13_spill] sm:$0xff]  ;;  %3342 = vst [vmem:[#allocation23_spill] sm:$0xff] %v2721_v54  ;;  %v2733_v40 = vld [vmem:[%s3205_s1 + $0x2] ss:$0 sm:$0xff]  ;;  %v3344_v19 = vld [vmem:[#allocation20_spill] sm:$0xff] }
  0x72   : > { %1848 = vmatmul.msk.f32.gmra.mxu1 %vm1268_vm0, %v1246_v21  ;;  %v718_v7 = vmul.f32 %v1993_v5, %v2487_v10  ;;  %v1061_v63 = vadd.f32 %v1029_v14, %v963_v23  ;;  %v553_v37 = vadd.f32 %v521_v52, %v455_v49  ;;  %v334_v58 = vmul.f32 %v2714_v4, %v3340_v8  ;;  %v3343_v14 = vld [vmem:[#allocation18_spill] sm:$0xff]  ;;  %v3346_v20 = vld [vmem:[#allocation12_spill] sm:$0xff]  ;;  %v3347_v8 = vld [vmem:[#allocation21_spill] sm:$0xff] }
  0x73   : > { %v1223_v18 = vadd.f32 %v2207_v50, %v1187_v1  ;;  %v840_v9 = vadd.f32 %v808_v12, %v742_v3  ;;  %v816_v5 = vmul.f32 %v1998_v6, %v3341_v39  ;;  %v432_v15 = vmul.f32 %v2726_v0, %v3343_v14  ;;  %v2740_v33 = vld [vmem:[%s3205_s1 + $0x6] ss:$0 sm:$0xff]  ;;  %v2747_v28 = vld [vmem:[%s3205_s1 + $0x7] ss:$0 sm:$0xff]  ;;  %v3345_v1 = vld [vmem:[#allocation11_spill] sm:$0xff] }
  0x74   : > { %v530_v48 = vmul.f32 %v2733_v40, %v3344_v19  ;;  %v1159_v6 = vadd.f32 %v1127_v57, %v1061_v63  ;;  %v652_v55 = vadd.f32 %v620_v2, %v553_v37  ;;  %v915_v52 = vmul.f32 %v2740_v33, %v2705_v45  ;;  %v2754_v57 = vld [vmem:[%s3205_s1 + $0x3] ss:$0 sm:$0xff]  ;;  %v2763_v2 = vld [vmem:[%s3205_s1 + $0x8] ss:$0 sm:$0xff]  ;;  %v2770_v47 = vld [vmem:[%s3205_s1 + $0x4] ss:$0 sm:$0xff] }
  0x75   : > { %v1255_v56 = vmax.f32 %v1223_v18, 0.0  ;;  %v939_v21 = vadd.f32 %v907_v17, %v840_v9  ;;  %v1013_v12 = vmul.f32 %v2747_v28, %v2709_v44  ;;  %v464_v11 = vadd.f32 %v432_v15, %v334_v58  ;;  %v3348_v58 = vld [vmem:[#allocation22_spill] sm:$0xff] }
  0x76   : > { %v629_v23 = vmul.f32 %v2754_v57, %v3345_v1  ;;  %v1195_v17 = vmul.f32 %v2186_v24, %v1159_v6  ;;  %v750_v49 = vadd.f32 %v718_v7, %v652_v55  ;;  %v1111_v3 = vmul.f32 %v2763_v2, %v2721_v54  ;;  %v2782_v19 = vld [vmem:[%s3205_s1 + $0x5] ss:$0 sm:$0xff]  ;;  %v3352_v54 = vld [vmem:[#allocation19_spill] sm:$0xff] }
  0x77   : > { %1857 = vmatmul.msk.f32.gmra.mxu2 %vm1268_vm0, %v1255_v56  ;;  %v727_v18 = vmul.f32 %v2770_v47, %v3346_v20  ;;  %v1037_v63 = vadd.f32 %v1005_v25, %v939_v21  ;;  %v562_v37 = vadd.f32 %v530_v48, %v464_v11  ;;  %v342_v7 = vmul.f32 %v2714_v4, %v3347_v8  ;;  %v3349_v56 = vld [vmem:[#allocation17_spill] sm:$0xff] }
  0x78   : > { %v440_v9 = vmul.f32 %v2726_v0, %v3348_v58  ;;  %v1231_v14 = vadd.f32 %v2207_v50, %v1195_v17  ;;  %v848_v15 = vadd.f32 %v816_v5, %v750_v49  ;;  %v825_v6 = vmul.f32 %v2782_v19, %v3349_v56  ;;  %v3350_v49 = vld [vmem:[#allocation14_spill] sm:$0xff]  ;;  %v3351_v58 = vld [vmem:[#allocation15_spill] sm:$0xff] }
  0x79   : > { %v538_v25 = vmul.f32 %v2733_v40, %v3323_v46  ;;  %v1135_v48 = vadd.f32 %v1103_v32, %v1037_v63  ;;  %v661_v55 = vadd.f32 %v629_v23, %v562_v37  ;;  %v637_v11 = vmul.f32 %v2754_v57, %v2543_v61  ;;  %v3353_v63 = vld [vmem:[#allocation24_spill] sm:$0xff]  ;;  %v2801_v37 = vld [vmem:[%s2008_s22 + $0x188] sm:$0xff] }
  0x7a   : > { %v472_v21 = vadd.f32 %v440_v9, %v342_v7  ;;  %v1263_v17 = vmax.f32 %v1231_v14, 0.0  ;;  %v947_v5 = vadd.f32 %v915_v52, %v848_v15  ;;  %v924_v8 = vmul.f32 %v2740_v33, %v3350_v49  ;;  %v3354_v7 = vld [vmem:[#allocation30_spill] sm:$0xff]  ;;  %v3355_v14 = vld [vmem:[#allocation31_spill] sm:$0xff] }
  0x7b   : > { %v1022_v20 = vmul.f32 %v2747_v28, %v3351_v58  ;;  %v1171_v56 = vmul.f32 %v2186_v24, %v1135_v48  ;;  %v759_v1 = vadd.f32 %v727_v18, %v661_v55  ;;  %v735_v32 = vmul.f32 %v2770_v47, %v3352_v54  ;;  %v2809_v55 = vld [vmem:[%s2008_s22 + $0x189] sm:$0xff] }
  0x7c   : > { %v570_v46 = vadd.f32 %v538_v25, %v472_v21  ;;  %1865 = vmatmul.msk.f32.gmra.mxu3 %vm1268_vm0, %v1263_v17  ;;  %v1045_v23 = vadd.f32 %v1013_v12, %v947_v5  ;;  %v833_v52 = vmul.f32 %v2782_v19, %v3353_v63  ;;  %v318_v9 = vmul.f32 %v2714_v4, %v3354_v7  ;;  %v3356_v17 = vld [vmem:[#allocation16_spill] sm:$0xff] }
  0x7d   : > { %v416_v15 = vmul.f32 %v2726_v0, %v3355_v14  ;;  %v1207_v18 = vadd.f32 %v2207_v50, %v1171_v56  ;;  %v857_v25 = vadd.f32 %v825_v6, %v759_v1  ;;  %v514_v12 = vmul.f32 %v2733_v40, %v3329_v62  ;;  %v2823_v62 = vld [vmem:[%s2008_s22 + $0x18a] sm:$0xff] }
  0x7e   : > { %v669_v48 = vadd.f32 %v637_v11, %v570_v46  ;;  %v1143_v21 = vadd.f32 %v1111_v3, %v1045_v23  ;;  %v1120_v5 = vmul.f32 %v2763_v2, %v3356_v17  ;;  %v613_v58 = vmul.f32 %v2754_v57, %v2573_v38 }
  0x7f   : > { %v448_v49 = vadd.f32 %v416_v15, %v318_v9  ;;  %v1239_v7 = vmax.f32 %v1207_v18, 0.0  ;;  %v956_v14 = vadd.f32 %v924_v8, %v857_v25  ;;  %v932_v1 = vmul.f32 %v2740_v33, %v2801_v37  ;;  %v3358_v25 = vld [vmem:[#allocation37_spill] sm:$0xff] }
  0x80   : > { %v767_v63 = vadd.f32 %v735_v32, %v669_v48  ;;  %v1179_v56 = vmul.f32 %v2186_v24, %v1143_v21  ;;  %v1030_v6 = vmul.f32 %v2747_v28, %v2809_v55  ;;  %v711_v11 = vmul.f32 %v2770_v47, %v2576_v16  ;;  %v3357_v32 = vld [vmem:[#allocation36_spill] sm:$0xff] }
  0x81   : > { %v546_v3 = vadd.f32 %v514_v12, %v448_v49  ;;  %1841 = vmatmul.msk.f32.gmra.mxu0 %vm1268_vm0, %v1239_v7  ;;  %v1054_v46 = vadd.f32 %v1022_v20, %v956_v14  ;;  %v809_v8 = vmul.f32 %v2782_v19, %v2595_v42  ;;  %v326_v9 = vmul.f32 %v2714_v4, %v3357_v32  ;;  %v3359_v12 = vld [vmem:[#allocation38_spill] sm:$0xff] }
  0x82   : > { %v865_v23 = vadd.f32 %v833_v52, %v767_v63  ;;  %v1215_v15 = vadd.f32 %v2207_v50, %v1179_v56  ;;  %v424_v48 = vmul.f32 %v2726_v0, %v3358_v25  ;;  %v522_v21 = vmul.f32 %v2733_v40, %v3359_v12  ;;  %v3360_v63 = vld [vmem:[#allocation27_spill] sm:$0xff] }
  0x83   : > { %v645_v18 = vadd.f32 %v613_v58, %v546_v3  ;;  %v1152_v17 = vadd.f32 %v1120_v5, %v1054_v46  ;;  %v1128_v20 = vmul.f32 %v2763_v2, %v2823_v62  ;;  %v908_v52 = vmul.f32 %v2740_v33, %v3360_v63  ;;  %v3361_v5 = vld [vmem:[#allocation28_spill] sm:$0xff]  ;;  %v3362_v46 = vld [vmem:[#allocation29_spill] sm:$0xff]  ;;  %v2849_v25 = vld [vmem:[%s2008_s22 + $0xc8] sm:$0xff] }
  0x84   : > { %v964_v49 = vadd.f32 %v932_v1, %v865_v23  ;;  %v1247_v7 = vmax.f32 %v1215_v15, 0.0  ;;  %v456_v56 = vadd.f32 %v424_v48, %v326_v9  ;;  %v621_v58 = vmul.f32 %v2754_v57, %v2603_v43 }
  0x85   : > { %v743_v14 = vadd.f32 %v711_v11, %v645_v18  ;;  %v1188_v3 = vmul.f32 %v2186_v24, %v1152_v17  ;;  %v1006_v1 = vmul.f32 %v2747_v28, %v3361_v5  ;;  %v1104_v23 = vmul.f32 %v2763_v2, %v3362_v46  ;;  %v2859_v17 = vld [vmem:[%s2008_s22 + $0xc9] sm:$0xff] }
  0x86   : > { %v1062_v32 = vadd.f32 %v1030_v6, %v964_v49  ;;  %1849 = vmatmul.msk.f32.gmra.mxu1 %vm1268_vm0, %v1247_v7  ;;  %v554_v9 = vadd.f32 %v522_v21, %v456_v56  ;;  %v719_v15 = vmul.f32 %v2770_v47, %v2611_v29  ;;  %v335_v18 = vmul.f32 %v2714_v4, %v3333_v27  ;;  %v1667_v6 = vld [vmem:[%s2008_s22 + $0x120] sm:$0xff]  ;;  %v2862_v49 = vld [vmem:[%s2008_s22 + $0xca] sm:$0xff] }
  0x87   : > { %v841_v11 = vadd.f32 %v809_v8, %v743_v14  ;;  %v1224_v48 = vadd.f32 %v2207_v50, %v1188_v3  ;;  %v433_v63 = vmul.f32 %v2726_v0, %v2398_v34  ;;  %v531_v8 = vmul.f32 %v2733_v40, %v2401_v31  ;;  %v1699_v14 = vld [vmem:[%s2008_s22 + $0x121] sm:$0xff] }
  0x88   : > { %v1160_v12 = vadd.f32 %v1128_v20, %v1062_v32  ;;  %v653_v7 = vadd.f32 %v621_v58, %v554_v9  ;;  %v817_v27 = vmul.f32 %v2782_v19, %v2625_v51  ;;  %v916_v20 = vmul.f32 %v2740_v33, %v2849_v25  ;;  %v1731_v58 = vld [vmem:[%s2008_s22 + $0x122] sm:$0xff] }
  0x89   : > { %v940_v21 = vadd.f32 %v908_v52, %v841_v11  ;;  %v1256_v56 = vmax.f32 %v1224_v48, 0.0  ;;  %v465_v32 = vadd.f32 %v433_v63, %v335_v18  ;;  %v630_v34 = vmul.f32 %v2754_v57, %v1667_v6  ;;  %v1763_v11 = vld [vmem:[%s2008_s22 + $0x138] sm:$0xff] }
  0x8a   : > { %v1196_v3 = vmul.f32 %v2186_v24, %v1160_v12  ;;  %v751_v46 = vadd.f32 %v719_v15, %v653_v7  ;;  %v1014_v31 = vmul.f32 %v2747_v28, %v2859_v17  ;;  %v1112_v52 = vmul.f32 %v2763_v2, %v2862_v49  ;;  %v1795_v48 = vld [vmem:[%s2008_s22 + $0x139] sm:$0xff] }
  0x8b   : > { %v1038_v5 = vadd.f32 %v1006_v1, %v940_v21  ;;  %1858 = vmatmul.msk.f32.gmra.mxu2 %vm1268_vm0, %v1256_v56  ;;  %v563_v24 = vadd.f32 %v531_v8, %v465_v32  ;;  %v728_v18 = vmul.f32 %v2770_v47, %v1699_v14  ;;  %v343_v6 = vmul.f32 %v2714_v4, %v2421_v26  ;;  %v1827_v12 = vld [vmem:[%s2008_s22 + $0x13a] sm:$0xff] }
  0x8c   : > { %v1232_v9 = vadd.f32 %v2207_v50, %v1196_v3  ;;  %v849_v15 = vadd.f32 %v817_v27, %v751_v46  ;;  %v441_v63 = vmul.f32 %v2726_v0, %v2427_v41  ;;  %v539_v21 = vmul.f32 %v2733_v40, %v2435_v53  ;;  %v2897_v26 = vld [vmem:[%s3206_s2] ss:$0 sm:$0xff] }
  0x8d   : > { %v1136_v1 = vadd.f32 %v1104_v23, %v1038_v5  ;;  %v662_v56 = vadd.f32 %v630_v34, %v563_v24  ;;  %v826_v50 = vmul.f32 %v2782_v19, %v1731_v58  ;;  %v925_v8 = vmul.f32 %v2740_v33, %v1763_v11  ;;  %v1771_v5 = vld [vmem:[%s2008_s22 + $0x198] sm:$0xff]  ;;  %v1651_v24 = vld [vmem:[%s2008_s22 + $0x60] sm:$0xff] }
  0x8e   : > { %v1264_v7 = vmax.f32 %v1232_v9, 0.0  ;;  %v948_v41 = vadd.f32 %v916_v20, %v849_v15  ;;  %v473_v27 = vadd.f32 %v441_v63, %v343_v6  ;;  %v638_v53 = vmul.f32 %v2754_v57, %v2651_v60  ;;  %v2911_v20 = vld [vmem:[%s3207_s3] ss:$0 sm:$0xff] }
  0x8f   : > { %v1172_v23 = vmul.f32 %v2897_v26, %v1136_v1  ;;  %v760_v14 = vadd.f32 %v728_v18, %v662_v56  ;;  %v1023_v3 = vmul.f32 %v2747_v28, %v1795_v48  ;;  %v1121_v32 = vmul.f32 %v2763_v2, %v1827_v12  ;;  %v1803_v11 = vld [vmem:[%s2008_s22 + $0x199] sm:$0xff]  ;;  %v1683_v48 = vld [vmem:[%s2008_s22 + $0x61] sm:$0xff] }
  0x90   : > { %1866 = vmatmul.msk.f32.gmra.mxu3 %vm1268_vm0, %v1264_v7  ;;  %v736_v34 = vmul.f32 %v2770_v47, %v2660_v35  ;;  %v1046_v46 = vadd.f32 %v1014_v31, %v948_v41  ;;  %v571_v58 = vadd.f32 %v539_v21, %v473_v27  ;;  %v319_v9 = vmul.f32 %v2714_v4, %v2451_v22  ;;  %v1835_v6 = vld [vmem:[%s2008_s22 + $0x19a] sm:$0xff] }
  0x91   : > { %v1208_v60 = vadd.f32 %v2911_v20, %v1172_v23  ;;  %v858_v18 = vadd.f32 %v826_v50, %v760_v14  ;;  %v834_v35 = vmul.f32 %v2782_v19, %v2663_v59  ;;  %v417_v1 = vmul.f32 %v2726_v0, %v2458_v13  ;;  %v1715_v50 = vld [vmem:[%s2008_s22 + $0x62] sm:$0xff]  ;;  %v1779_v14 = vld [vmem:[%s2008_s22 + $0x79] sm:$0xff] }
  0x92   : > { %v515_v15 = vmul.f32 %v2733_v40, %v2472_v30  ;;  %v1144_v12 = vadd.f32 %v1112_v52, %v1046_v46  ;;  %v670_v63 = vadd.f32 %v638_v53, %v571_v58  ;;  %v933_v22 = vmul.f32 %v2740_v33, %v1771_v5  ;;  %v1747_v53 = vld [vmem:[%s2008_s22 + $0x78] sm:$0xff] }
  0x93   : > { %v1240_v31 = vmax.f32 %v1208_v60, 0.0  ;;  %v957_v21 = vadd.f32 %v925_v8, %v858_v18  ;;  %v1031_v7 = vmul.f32 %v2747_v28, %v1803_v11  ;;  %v449_v56 = vadd.f32 %v417_v1, %v319_v9 }
  0x94   : > { %v614_v59 = vmul.f32 %v2754_v57, %v1651_v24  ;;  %v1180_v13 = vmul.f32 %v2897_v26, %v1144_v12  ;;  %v768_v30 = vadd.f32 %v736_v34, %v670_v63  ;;  %v1129_v23 = vmul.f32 %v2763_v2, %v1835_v6  ;;  %v1755_v63 = vld [vmem:[%s2008_s22 + $0xd8] sm:$0xff] }
  0x95   : > { %1842 = vmatmul.msk.f32.gmra.mxu0 %vm1268_vm0, %v1240_v31  ;;  %v712_v52 = vmul.f32 %v2770_v47, %v1683_v48  ;;  %v1055_v41 = vadd.f32 %v1023_v3, %v957_v21  ;;  %v547_v27 = vadd.f32 %v515_v15, %v449_v56  ;;  %v327_v8 = vmul.f32 %v2714_v4, %v2481_v36  ;;  %v1811_v15 = vld [vmem:[%s2008_s22 + $0x7a] sm:$0xff]  ;;  %v1668_v48 = vld [vmem:[%s2008_s22 + $0x128] sm:$0xff]  ;;  %v3365_v56 = vld [vmem:[#allocation12_spill] sm:$0xff] }
  0x96   : > { %v425_v5 = vmul.f32 %v2726_v0, %v2487_v10  ;;  %v1216_v60 = vadd.f32 %v2911_v20, %v1180_v13  ;;  %v866_v46 = vadd.f32 %v834_v35, %v768_v30  ;;  %v810_v34 = vmul.f32 %v2782_v19, %v1715_v50  ;;  %v3363_v31 = vld [vmem:[#allocation23_spill] sm:$0xff]  ;;  %v1787_v30 = vld [vmem:[%s2008_s22 + $0xd9] sm:$0xff] }
  0x97   : > { %v523_v58 = vmul.f32 %v2733_v40, %v3341_v39  ;;  %v1153_v3 = vadd.f32 %v1121_v32, %v1055_v41  ;;  %v646_v11 = vadd.f32 %v614_v59, %v547_v27  ;;  %v622_v36 = vmul.f32 %v2754_v57, %v2705_v45 }
  0x98   : > { %v457_v9 = vadd.f32 %v425_v5, %v327_v8  ;;  %v1248_v24 = vmax.f32 %v1216_v60, 0.0  ;;  %v965_v18 = vadd.f32 %v933_v22, %v866_v46  ;;  %v909_v10 = vmul.f32 %v2740_v33, %v1747_v53  ;;  %v3364_v22 = vld [vmem:[#allocation11_spill] sm:$0xff] }
  0x99   : > { %v1007_v6 = vmul.f32 %v2747_v28, %v1779_v14  ;;  %v1189_v35 = vmul.f32 %v2897_v26, %v1153_v3  ;;  %v744_v1 = vadd.f32 %v712_v52, %v646_v11  ;;  %v720_v32 = vmul.f32 %v2770_v47, %v2709_v44  ;;  %v3366_v52 = vld [vmem:[#allocation17_spill] sm:$0xff]  ;;  %v1732_v5 = vld [vmem:[%s2008_s22 + $0x12a] sm:$0xff] }
  0x9a   : > { %v555_v39 = vadd.f32 %v523_v58, %v457_v9  ;;  %1850 = vmatmul.msk.f32.gmra.mxu1 %vm1268_vm0, %v1248_v24  ;;  %v1063_v45 = vadd.f32 %v1031_v7, %v965_v18  ;;  %v818_v12 = vmul.f32 %v2782_v19, %v3363_v31  ;;  %v336_v21 = vmul.f32 %v2714_v4, %v3364_v22  ;;  %v1700_v7 = vld [vmem:[%s2008_s22 + $0x129] sm:$0xff]  ;;  %v1819_v9 = vld [vmem:[%s2008_s22 + $0xda] sm:$0xff] }
  0x9b   : > { %v434_v59 = vmul.f32 %v2726_v0, %v3365_v56  ;;  %v1225_v50 = vadd.f32 %v2911_v20, %v1189_v35  ;;  %v842_v13 = vadd.f32 %v810_v34, %v744_v1  ;;  %v532_v41 = vmul.f32 %v2733_v40, %v3366_v52  ;;  %v1764_v24 = vld [vmem:[%s2008_s22 + $0x140] sm:$0xff] }
  0x9c   : > { %v654_v44 = vadd.f32 %v622_v36, %v555_v39  ;;  %v1161_v27 = vadd.f32 %v1129_v23, %v1063_v45  ;;  %v1105_v53 = vmul.f32 %v2763_v2, %v1811_v15  ;;  %v631_v8 = vmul.f32 %v2754_v57, %v1668_v48  ;;  %v3367_v45 = vld [vmem:[#allocation24_spill] sm:$0xff] }
  0x9d   : > { %v466_v14 = vadd.f32 %v434_v59, %v336_v21  ;;  %v1257_v60 = vmax.f32 %v1225_v50, 0.0  ;;  %v941_v46 = vadd.f32 %v909_v10, %v842_v13  ;;  %v917_v34 = vmul.f32 %v2740_v33, %v1755_v63 }
  0x9e   : > { %v752_v58 = vadd.f32 %v720_v32, %v654_v44  ;;  %v1197_v3 = vmul.f32 %v2897_v26, %v1161_v27  ;;  %v1015_v11 = vmul.f32 %v2747_v28, %v1787_v30  ;;  %v729_v23 = vmul.f32 %v2770_v47, %v1700_v7  ;;  %v1796_v32 = vld [vmem:[%s2008_s22 + $0x141] sm:$0xff] }
  0x9f   : > { %v564_v36 = vadd.f32 %v532_v41, %v466_v14  ;;  %1859 = vmatmul.msk.f32.gmra.mxu2 %vm1268_vm0, %v1257_v60  ;;  %v1039_v18 = vadd.f32 %v1007_v6, %v941_v46  ;;  %v827_v1 = vmul.f32 %v2782_v19, %v1732_v5  ;;  %v344_v10 = vmul.f32 %v2714_v4, %v2543_v61  ;;  %v1828_v44 = vld [vmem:[%s2008_s22 + $0x142] sm:$0xff] }
  0xa0   : > { %v850_v35 = vadd.f32 %v818_v12, %v752_v58  ;;  %v1233_v15 = vadd.f32 %v2911_v20, %v1197_v3  ;;  %v442_v48 = vmul.f32 %v2726_v0, %v3352_v54  ;;  %v540_v31 = vmul.f32 %v2733_v40, %v3367_v45  ;;  %v1652_v27 = vld [vmem:[%s2008_s22 + $0x68] sm:$0xff]  ;;  %v1772_v14 = vld [vmem:[%s2008_s22 + $0x1a0] sm:$0xff] }
  0xa1   : > { %v663_v39 = vadd.f32 %v631_v8, %v564_v36  ;;  %v1137_v63 = vadd.f32 %v1105_v53, %v1039_v18  ;;  %v1113_v6 = vmul.f32 %v2763_v2, %v1819_v9  ;;  %v926_v12 = vmul.f32 %v2740_v33, %v1764_v24  ;;  %v1804_v8 = vld [vmem:[%s2008_s22 + $0x1a1] sm:$0xff] }
  0xa2   : > { %v949_v22 = vadd.f32 %v917_v34, %v850_v35  ;;  %v1265_v21 = vmax.f32 %v1233_v15, 0.0  ;;  %v474_v56 = vadd.f32 %v442_v48, %v344_v10  ;;  %v639_v59 = vmul.f32 %v2754_v57, %v2801_v37  ;;  %v1684_v34 = vld [vmem:[%s2008_s22 + $0x69] sm:$0xff]  ;;  %v1748_v48 = vld [vmem:[%s2008_s22 + $0x80] sm:$0xff] }
  0xa3   : > { %v761_v61 = vadd.f32 %v729_v23, %v663_v39  ;;  %v1173_v54 = vmul.f32 %v2897_v26, %v1137_v63  ;;  %v1024_v13 = vmul.f32 %v2747_v28, %v1796_v32  ;;  %v737_v41 = vmul.f32 %v2770_v47, %v2809_v55  ;;  %v1836_v18 = vld [vmem:[%s2008_s22 + $0x1a2] sm:$0xff]  ;;  %v1716_v35 = vld [vmem:[%s2008_s22 + $0x6a] sm:$0xff] }
  0xa4   : > { %v1047_v50 = vadd.f32 %v1015_v11, %v949_v22  ;;  %1867 = vmatmul.msk.f32.gmra.mxu3 %vm1268_vm0, %v1265_v21  ;;  %v572_v52 = vadd.f32 %v540_v31, %v474_v56  ;;  %v320_v7 = vmul.f32 %v2714_v4, %v2573_v38  ;;  %v418_v5 = vmul.f32 %v2726_v0, %v2576_v16  ;;  %v3042_v56 = vld [vmem:[%s3210_s6] ss:$0 sm:$0xff] }
  0xa5   : > { %v859_v30 = vadd.f32 %v827_v1, %v761_v61  ;;  %v1209_v37 = vadd.f32 %v2911_v20, %v1173_v54  ;;  %v516_v60 = vmul.f32 %v2733_v40, %v2595_v42  ;;  %v1122_v55 = vmul.f32 %v2763_v2, %v1828_v44  ;;  %v1780_v61 = vld [vmem:[%s2008_s22 + $0x81] sm:$0xff] }
  0xa6   : > { %v1145_v53 = vadd.f32 %v1113_v6, %v1047_v50  ;;  %v671_v58 = vadd.f32 %v639_v59, %v572_v52  ;;  %v835_v38 = vmul.f32 %v2782_v19, %v2823_v62  ;;  %v450_v9 = vadd.f32 %v418_v5, %v320_v7  ;;  %v1812_v50 = vld [vmem:[%s2008_s22 + $0x82] sm:$0xff] }
  0xa7   : > { %v958_v46 = vadd.f32 %v926_v12, %v859_v30  ;;  %v1241_v3 = vmax.f32 %v1209_v37, 0.0  ;;  %v615_v36 = vmul.f32 %v2754_v57, %v1652_v27  ;;  %v934_v24 = vmul.f32 %v2740_v33, %v1772_v14 }
  0xa8   : > { %v1181_v11 = vmul.f32 %v2897_v26, %v1145_v53  ;;  %v769_v23 = vadd.f32 %v737_v41, %v671_v58  ;;  %v1032_v42 = vmul.f32 %v2747_v28, %v1804_v8  ;;  %v548_v1 = vadd.f32 %v516_v60, %v450_v9  ;;  %v1756_v41 = vld [vmem:[%s2008_s22 + $0xe0] sm:$0xff] }
  0xa9   : > { %v1056_v16 = vadd.f32 %v1024_v13, %v958_v46  ;;  %1843 = vmatmul.msk.f32.gmra.mxu0 %vm1268_vm0, %v1241_v3  ;;  %v713_v10 = vmul.f32 %v2770_v47, %v1684_v34  ;;  %v328_v15 = vmul.f32 %v2714_v4, %v2603_v43  ;;  %v426_v45 = vmul.f32 %v2726_v0, %v2611_v29  ;;  %v3030_v43 = vld [vmem:[%s3209_s5] ss:$0 sm:$0xff]  ;;  %v1820_v34 = vld [vmem:[%s2008_s22 + $0xe2] sm:$0xff] }
  0xaa   : > { %v1217_v62 = vadd.f32 %v2911_v20, %v1181_v11  ;;  %v867_v32 = vadd.f32 %v835_v38, %v769_v23  ;;  %v524_v31 = vmul.f32 %v2733_v40, %v2625_v51  ;;  %v1130_v22 = vmul.f32 %v2763_v2, %v1836_v18 }
  0xab   : > { %v1154_v39 = vadd.f32 %v1122_v55, %v1056_v16  ;;  %v647_v6 = vadd.f32 %v615_v36, %v548_v1  ;;  %v811_v12 = vmul.f32 %v2782_v19, %v1716_v35  ;;  %v458_v29 = vadd.f32 %v426_v45, %v328_v15 }
  0xac   : > { %v1249_v63 = vmax.f32 %v1217_v62, 0.0  ;;  %v966_v21 = vadd.f32 %v934_v24, %v867_v32  ;;  %v623_v51 = vmul.f32 %v2754_v57, %v2849_v25  ;;  %v910_v40 = vmul.f32 %v2740_v33, %v1748_v48 }
  0xad   : > { %v1190_v4 = vmul.f32 %v2897_v26, %v1154_v39  ;;  %v745_v0 = vadd.f32 %v713_v10, %v647_v6  ;;  %v556_v13 = vadd.f32 %v524_v31, %v458_v29  ;;  %v721_v57 = vmul.f32 %v2770_v47, %v2859_v17 }
  0xae   : > { %1851 = vmatmul.msk.f32.gmra.mxu1 %vm1268_vm0, %v1249_v63  ;;  %v1064_v54 = vadd.f32 %v1032_v42, %v966_v21  ;;  %v1430_v25 = vpop.f32.mrf.mxu2  ;;  %v1008_v30 = vmul.f32 %v2747_v28, %v1780_v61  ;;  %v819_v52 = vmul.f32 %v2782_v19, %v2862_v49  ;;  %v1382_v7 = vpop.f32.mrf.mxu0  ;;  %v1106_v8 = vmul.f32 %v2763_v2, %v1812_v50  ;;  %v1788_v19 = vld [vmem:[%s2008_s22 + $0xe1] sm:$0xff] }
  0xaf   : > { %v1226_v59 = vadd.f32 %v2911_v20, %v1190_v4  ;;  %v843_v44 = vadd.f32 %v811_v12, %v745_v0  ;;  %v1498_v27 = vmul.f32 %v3030_v43, %v1430_v25  ;;  %v655_v14 = vadd.f32 %v623_v51, %v556_v13 }
  0xb0   : > { %v1162_v53 = vadd.f32 %v1130_v22, %v1064_v54  ;;  %v1482_v47 = vmul.f32 %v3030_v43, %v1382_v7  ;;  %v918_v46 = vmul.f32 %v2740_v33, %v1756_v41  ;;  %v1016_v16 = vmul.f32 %v2747_v28, %v1788_v19 }
  0xb1   : > { %v1258_v37 = vmax.f32 %v1226_v59, 0.0  ;;  %v942_v17 = vadd.f32 %v910_v40, %v843_v44  ;;  %v1534_v49 = vadd.f32 %v3042_v56, %v1498_v27  ;;  %v753_v60 = vadd.f32 %v721_v57, %v655_v14  ;;  %v1454_v58 = vpop.f32.mrf.mxu3 }
  0xb2   : > { %v1198_v5 = vmul.f32 %v2897_v26, %v1162_v53  ;;  %v1518_v55 = vadd.f32 %v3042_v56, %v1482_v47  ;;  %v1406_v3 = vpop.f32.mrf.mxu1  ;;  %v1506_v11 = vmul.f32 %v3030_v43, %v1454_v58  ;;  %v1114_v35 = vmul.f32 %v2763_v2, %v1820_v34 }
  0xb3   : > { %1860 = vmatmul.msk.f32.gmra.mxu2 %vm1268_vm0, %v1258_v37  ;;  %v1040_v38 = vadd.f32 %v1008_v30, %v942_v17  ;;  %1566 = vst.msk [vmem:[%s3056_s18 + $0x80] sm:$0xff] %vm1268_vm0, %v1534_v49  ;;  %v851_v36 = vadd.f32 %v819_v52, %v753_v60  ;;  %v1490_v33 = vmul.f32 %v3030_v43, %v1406_v3 }
  0xb4   : > { %v1234_v9 = vadd.f32 %v2911_v20, %v1198_v5  ;;  %1550 = vst.msk [vmem:[%s3056_s18] sm:$0xff] %vm1268_vm0, %v1518_v55  ;;  %v1542_v24 = vadd.f32 %v3042_v56, %v1506_v11 }
  0xb5   : > { %v1138_v23 = vadd.f32 %v1106_v8, %v1040_v38  ;;  %v950_v18 = vadd.f32 %v918_v46, %v851_v36  ;;  %v1526_v62 = vadd.f32 %v3042_v56, %v1490_v33 }
  0xb6   : > { %v1266_v42 = vmax.f32 %v1234_v9, 0.0  ;;  %1574 = vst.msk [vmem:[%s3056_s18 + $0xc0] sm:$0xff] %vm1268_vm0, %v1542_v24 }
  0xb7   : > { %v1174_v1 = vmul.f32 %v2897_v26, %v1138_v23  ;;  %v1048_v28 = vadd.f32 %v1016_v16, %v950_v18  ;;  %1558 = vst.msk [vmem:[%s3056_s18 + $0x40] sm:$0xff] %vm1268_vm0, %v1526_v62 }
  0xb8   : > { %1868 = vmatmul.msk.f32.gmra.mxu3 %vm1268_vm0, %v1266_v42 }
  0xb9   : > { %v1210_v10 = vadd.f32 %v2911_v20, %v1174_v1  ;;  %v1146_v15 = vadd.f32 %v1114_v35, %v1048_v28 }
  0xbb   : > { %v1242_v39 = vmax.f32 %v1210_v10, 0.0  ;;  %v1182_v32 = vmul.f32 %v2897_v26, %v1146_v15 }
  0xbd   : > { %1844 = vmatmul.msk.f32.gmra.mxu0 %vm1268_vm0, %v1242_v39  ;;  %v1433_v2 = vpop.f32.mrf.mxu2  ;;  %v1218_v48 = vadd.f32 %v2911_v20, %v1182_v32 }
  0xbe   : > { %v1499_v45 = vmul.f32 %v3030_v43, %v1433_v2 }
  0xbf   : > { %v1250_v31 = vmax.f32 %v1218_v48, 0.0 }
  0xc0   : > { %v1535_v63 = vadd.f32 %v3042_v56, %v1499_v45 }
  0xc1   : > { %1852 = vmatmul.msk.f32.gmra.mxu1 %vm1268_vm0, %v1250_v31 }
  0xc2   : > { %1567 = vst.msk [vmem:[%s3056_s18 + $0x88] sm:$0xff] %vm1268_vm0, %v1535_v63 }
  0xc3   : > { %v1457_v22 = vpop.f32.mrf.mxu3 }
  0xc4   : > { %v1385_v26 = vpop.f32.mrf.mxu0  ;;  %v1507_v6 = vmul.f32 %v3030_v43, %v1457_v22 }
  0xc5   : > { %v1483_v12 = vmul.f32 %v3030_v43, %v1385_v26 }
  0xc6   : > { %v1543_v4 = vadd.f32 %v3042_v56, %v1507_v6 }
  0xc7   : > { %v1519_v20 = vadd.f32 %v3042_v56, %v1483_v12 }
  0xc8   : > { %v1409_v21 = vpop.f32.mrf.mxu1  ;;  %1575 = vst.msk [vmem:[%s3056_s18 + $0xc8] sm:$0xff] %vm1268_vm0, %v1543_v4 }
  0xc9   : > { %1551 = vst.msk [vmem:[%s3056_s18 + $0x8] sm:$0xff] %vm1268_vm0, %v1519_v20  ;;  %v1491_v61 = vmul.f32 %v3030_v43, %v1409_v21 }
  0xcb   : > { %v1527_v29 = vadd.f32 %v3042_v56, %v1491_v61 }
  0xcd   : > { %1559 = vst.msk [vmem:[%s3056_s18 + $0x48] sm:$0xff] %vm1268_vm0, %v1527_v29 }
  0xcf   : > { %v1436_v51 = vpop.f32.mrf.mxu2 }
  0xd0   : > { %v1500_v0 = vmul.f32 %v3030_v43, %v1436_v51 }
  0xd2   : > { %v1536_v40 = vadd.f32 %v3042_v56, %v1500_v0 }
  0xd4   : > { %1568 = vst.msk [vmem:[%s3056_s18 + $0x90] sm:$0xff] %vm1268_vm0, %v1536_v40 }
  0xd6   : > { %v1388_v59 = vpop.f32.mrf.mxu0 }
  0xd7   : > { %v1484_v54 = vmul.f32 %v3030_v43, %v1388_v59  ;;  %v1460_v50 = vpop.f32.mrf.mxu3 }
  0xd8   : > { %v1508_v13 = vmul.f32 %v3030_v43, %v1460_v50 }
  0xd9   : > { %v1520_v57 = vadd.f32 %v3042_v56, %v1484_v54 }
  0xda   : > { %v1544_v25 = vadd.f32 %v3042_v56, %v1508_v13 }
  0xdb   : > { %1552 = vst.msk [vmem:[%s3056_s18 + $0x10] sm:$0xff] %vm1268_vm0, %v1520_v57  ;;  %v1412_v44 = vpop.f32.mrf.mxu1 }
  0xdc   : > { %1576 = vst.msk [vmem:[%s3056_s18 + $0xd0] sm:$0xff] %vm1268_vm0, %v1544_v25  ;;  %v1492_v30 = vmul.f32 %v3030_v43, %v1412_v44 }
  0xde   : > { %v1528_v52 = vadd.f32 %v3042_v56, %v1492_v30 }
  0xe0   : > { %1560 = vst.msk [vmem:[%s3056_s18 + $0x50] sm:$0xff] %vm1268_vm0, %v1528_v52 }
  0xe6   : > { %v1439_v41 = vpop.f32.mrf.mxu2 }
  0xe7   : > { %v1501_v7 = vmul.f32 %v3030_v43, %v1439_v41 }
  0xe9   : > { %v1537_v27 = vadd.f32 %v3042_v56, %v1501_v7 }
  0xea   : > { %v1391_v37 = vpop.f32.mrf.mxu0 }
  0xeb   : > { %v1485_v53 = vmul.f32 %v3030_v43, %v1391_v37  ;;  %1569 = vst.msk [vmem:[%s3056_s18 + $0x98] sm:$0xff] %vm1268_vm0, %v1537_v27  ;;  %v1463_v14 = vpop.f32.mrf.mxu3 }
  0xec   : > { %v1509_v47 = vmul.f32 %v3030_v43, %v1463_v14 }
  0xed   : > { %v1521_v17 = vadd.f32 %v3042_v56, %v1485_v53 }
  0xee   : > { %v1545_v19 = vadd.f32 %v3042_v56, %v1509_v47 }
  0xef   : > { %v1415_v8 = vpop.f32.mrf.mxu1  ;;  %1553 = vst.msk [vmem:[%s3056_s18 + $0x18] sm:$0xff] %vm1268_vm0, %v1521_v17 }
  0xf0   : > { %v1493_v49 = vmul.f32 %v3030_v43, %v1415_v8  ;;  %1577 = vst.msk [vmem:[%s3056_s18 + $0xd8] sm:$0xff] %vm1268_vm0, %v1545_v19 }
  0xf2   : > { %v1529_v5 = vadd.f32 %v3042_v56, %v1493_v49 }
  0xf4   : > { %1561 = vst.msk [vmem:[%s3056_s18 + $0x58] sm:$0xff] %vm1268_vm0, %v1529_v5 }
  0xfa   : > { %v1442_v60 = vpop.f32.mrf.mxu2 }
  0xfb   : > { %v1502_v46 = vmul.f32 %v3030_v43, %v1442_v60 }
  0xfd   : > { %v1538_v55 = vadd.f32 %v3042_v56, %v1502_v46 }
  0xfe   : > { %v1394_v58 = vpop.f32.mrf.mxu0 }
  0xff   : > { %1570 = vst.msk [vmem:[%s3056_s18 + $0xa0] sm:$0xff] %vm1268_vm0, %v1538_v55  ;;  %v1486_v38 = vmul.f32 %v3030_v43, %v1394_v58  ;;  %v1466_v34 = vpop.f32.mrf.mxu3 }
 0x100   : > { %v1510_v3 = vmul.f32 %v3030_v43, %v1466_v34 }
 0x101   : > { %v1522_v11 = vadd.f32 %v3042_v56, %v1486_v38 }
 0x102   : > { %v1546_v9 = vadd.f32 %v3042_v56, %v1510_v3 }
 0x103   : > { %1554 = vst.msk [vmem:[%s3056_s18 + $0x20] sm:$0xff] %vm1268_vm0, %v1522_v11  ;;  %v1418_v36 = vpop.f32.mrf.mxu1 }
 0x104   : > { %v1494_v16 = vmul.f32 %v3030_v43, %v1418_v36  ;;  %1578 = vst.msk [vmem:[%s3056_s18 + $0xe0] sm:$0xff] %vm1268_vm0, %v1546_v9 }
 0x106   : > { %v1530_v33 = vadd.f32 %v3042_v56, %v1494_v16 }
 0x108   : > { %1562 = vst.msk [vmem:[%s3056_s18 + $0x60] sm:$0xff] %vm1268_vm0, %v1530_v33 }
 0x10e   : > { %v1445_v23 = vpop.f32.mrf.mxu2 }
 0x10f   : > { %v1503_v24 = vmul.f32 %v3030_v43, %v1445_v23 }
 0x111   : > { %v1539_v18 = vadd.f32 %v3042_v56, %v1503_v24 }
 0x112   : > { %v1397_v42 = vpop.f32.mrf.mxu0 }
 0x113   : > { %v1487_v35 = vmul.f32 %v3030_v43, %v1397_v42  ;;  %v1469_v62 = vpop.f32.mrf.mxu3  ;;  %1571 = vst.msk [vmem:[%s3056_s18 + $0xa8] sm:$0xff] %vm1268_vm0, %v1539_v18 }
 0x114   : > { %v1511_v1 = vmul.f32 %v3030_v43, %v1469_v62 }
 0x115   : > { %v1523_v28 = vadd.f32 %v3042_v56, %v1487_v35 }
 0x116   : > { %v1547_v10 = vadd.f32 %v3042_v56, %v1511_v1 }
 0x117   : > { %1555 = vst.msk [vmem:[%s3056_s18 + $0x28] sm:$0xff] %vm1268_vm0, %v1523_v28  ;;  %v1421_v15 = vpop.f32.mrf.mxu1 }
 0x118   : > { %1579 = vst.msk [vmem:[%s3056_s18 + $0xe8] sm:$0xff] %vm1268_vm0, %v1547_v10  ;;  %v1495_v39 = vmul.f32 %v3030_v43, %v1421_v15 }
 0x11a   : > { %v1531_v32 = vadd.f32 %v3042_v56, %v1495_v39 }
 0x11c   : > { %1563 = vst.msk [vmem:[%s3056_s18 + $0x68] sm:$0xff] %vm1268_vm0, %v1531_v32 }
 0x122   : > { %v1448_v2 = vpop.f32.mrf.mxu2 }
 0x123   : > { %v1504_v48 = vmul.f32 %v3030_v43, %v1448_v2 }
 0x125   : > { %v1540_v45 = vadd.f32 %v3042_v56, %v1504_v48 }
 0x126   : > { %v1400_v31 = vpop.f32.mrf.mxu0 }
 0x127   : > { %v1488_v63 = vmul.f32 %v3030_v43, %v1400_v31  ;;  %1572 = vst.msk [vmem:[%s3056_s18 + $0xb0] sm:$0xff] %vm1268_vm0, %v1540_v45  ;;  %v1472_v22 = vpop.f32.mrf.mxu3 }
 0x128   : > { %v1512_v26 = vmul.f32 %v3030_v43, %v1472_v22 }
 0x129   : > { %v1524_v6 = vadd.f32 %v3042_v56, %v1488_v63 }
 0x12a   : > { %v1548_v4 = vadd.f32 %v3042_v56, %v1512_v26 }
 0x12b   : > { %v1424_v12 = vpop.f32.mrf.mxu1  ;;  %1556 = vst.msk [vmem:[%s3056_s18 + $0x30] sm:$0xff] %vm1268_vm0, %v1524_v6 }
 0x12c   : > { %v1496_v20 = vmul.f32 %v3030_v43, %v1424_v12  ;;  %1580 = vst.msk [vmem:[%s3056_s18 + $0xf0] sm:$0xff] %vm1268_vm0, %v1548_v4 }
 0x12e   : > { %v1532_v21 = vadd.f32 %v3042_v56, %v1496_v20 }
 0x130   : > { %1564 = vst.msk [vmem:[%s3056_s18 + $0x70] sm:$0xff] %vm1268_vm0, %v1532_v21 }
 0x136   : > { %v1451_v61 = vpop.f32.mrf.mxu2 }
 0x137   : > { %v1505_v29 = vmul.f32 %v3030_v43, %v1451_v61 }
 0x139   : > { %v1541_v51 = vadd.f32 %v3042_v56, %v1505_v29 }
 0x13a   : > { %v1403_v0 = vpop.f32.mrf.mxu0 }
 0x13b   : > { %1573 = vst.msk [vmem:[%s3056_s18 + $0xb8] sm:$0xff] %vm1268_vm0, %v1541_v51  ;;  %v1489_v40 = vmul.f32 %v3030_v43, %v1403_v0  ;;  %v1475_v59 = vpop.f32.mrf.mxu3 }
 0x13c   : > { %v1513_v54 = vmul.f32 %v3030_v43, %v1475_v59 }
 0x13d   : > { %v1525_v50 = vadd.f32 %v3042_v56, %v1489_v40 }
 0x13e   : > { %v1549_v13 = vadd.f32 %v3042_v56, %v1513_v54  ;;  %v1427_v57 = vpop.f32.mrf.mxu1 }
 0x13f   : > { %1557 = vst.msk [vmem:[%s3056_s18 + $0x38] sm:$0xff] %vm1268_vm0, %v1525_v50  ;;  %v1497_v25 = vmul.f32 %v3030_v43, %v1427_v57 }
 0x140   : > { %1581 = vst.msk [vmem:[%s3056_s18 + $0xf8] sm:$0xff] %vm1268_vm0, %v1549_v13 }
 0x141   : > { %v1533_v44 = vadd.f32 %v3042_v56, %v1497_v25 }
 0x143   : > { %1565 = vst.msk [vmem:[%s3056_s18 + $0x78] sm:$0xff] %vm1268_vm0, %v1533_v44 }
 0x144 PF: > { %s17_s24 = sadd.s32 1, %s1914_s24  }
 0x145   : > { %p14_p4 = scmp.ge.s32.totalorder %s17_s24, 4  }
 0x147   :  { %16 = sbr.rel (!%p14_p4) target bundleno = 1 (0x1), region = 80 }

</bundles_post_ra>
